<compile_context>
chip_gen: v7x
topology: tpu7x:2x2x1
jax: 0.10.0
libtpu: 0.0.40
codegen_flags: <defaults>
</compile_context>

<pallas_src>
import jax
import jax.numpy as jnp
from jax.experimental import pallas as pl
from jax.experimental.pallas import tpu as pltpu

LEAKY_SLOPE = 0.2
EPS = 1e-5  # InstanceNorm2d default eps

# output-row-parity ry -> ((ConvT kernel tap kh, row offset into zero-padded d), ...)
# for ConvTranspose2d(kernel=4, stride=2, padding=1).  Same table for columns (rx/kw).
_TAPS = {0: ((1, 1), (3, 0)),
         1: ((2, 1), (0, 2))}


def _unet_inner_kernel(p_ref, wd_ref, wu_ref, out_ref, dpad_ref):
    """Fused down-conv -> ReLU -> transposed-conv -> InstanceNorm for ONE image.

    p_ref:   [1, M, 16*Cin]    bf16  im2col of pad1(leaky_relu(x)), M = Ho*Wo
    wd_ref:  [16*Cin, Cd]      bf16  packed Conv2d weight (K order = tap-major, chan-minor)
    wu_ref:  [4, 4*Cd, Cu]     bf16  packed ConvTranspose2d weight per output parity
    out_ref: [1, M, 4*Cu]      bf16  InstanceNorm'd up branch, parities packed along lanes
    dpad_ref:[Ho+2, Wo+2, Cd]  bf16  VMEM scratch holding zero-padded relu(d)
    """
    M = p_ref.shape[1]
    Cd = wd_ref.shape[1]
    Cu = wu_ref.shape[2]
    Hp, Wp, _ = dpad_ref.shape
    Ho, Wo = Hp - 2, Wp - 2
    inv_hw = 1.0 / float(4 * M)          # 1 / (H*W)

    # ---- down: Conv2d(k4, s2, p1) as ONE fat bf16 matmul (LeakyReLU folded into patches) ----
    d = jnp.dot(p_ref[0], wd_ref[...], preferred_element_type=jnp.float32)        # [M, Cd] f32

    # ---- ReLU + zero-pad(1) into the bf16 VMEM scratch: the intermediate never hits HBM ----
    # Scratch persists across grid steps: zero ONLY the halo (interior fully overwritten below).
    # Re-done every step: with "parallel" semantics a core may never run step 0, so a one-time
    # init would be unsafe.
    zrow = jnp.zeros((1, Wp, Cd), dpad_ref.dtype)
    zcol = jnp.zeros((Ho, 1, Cd), dpad_ref.dtype)
    dpad_ref[0:1, :, :] = zrow
    dpad_ref[Ho + 1:Hp, :, :] = zrow
    dpad_ref[1:Ho + 1, 0:1, :] = zcol
    dpad_ref[1:Ho + 1, Wo + 1:Wp, :] = zcol
    dpad_ref[1:Ho + 1, 1:Wo + 1, :] = (
        jnp.maximum(d, 0.0).reshape(Ho, Wo, Cd).astype(dpad_ref.dtype))
    dp = dpad_ref[...]                                                             # [Hp, Wp, Cd] bf16

    # Only 3 column-shifted slabs are materialized (sublane-dim shifts are the expensive
    # part); the 9 (row, col) tap slabs are free slices of the leading row axis of those 3.
    col_slabs = [dp[:, b:b + Wo, :] for b in range(3)]                             # each [Hp, Wo, Cd]

    def tap_slab(a, b):
        return col_slabs[b][a:a + Ho].reshape(M, Cd)

    # ---- up: ConvTranspose2d(k4, s2, p1) as 4 matmuls (one per output parity), ----
    # ---- accumulating InstanceNorm statistics on the fly in fp32.              ----
    # Per-parity results are held as M*Cu f32 values (tiny for the innermost block's spatial
    # sizes) so the full (2,2,M,Cu) block is never materialized and no out_ref read-back is needed.
    us = []
    ssum = jnp.zeros((1, Cu), jnp.float32)
    ssq = jnp.zeros((1, Cu), jnp.float32)
    for ry in range(2):
        for rx in range(2):
            pieces = [tap_slab(ah, aw)
                      for (_, ah) in _TAPS[ry] for (_, aw) in _TAPS[rx]]
            patch = jnp.concatenate(pieces, axis=-1)                               # [M, 4*Cd] bf16
            # TODO(synk): on v7x (MRB) 4 accumulating K=Cd dots would avoid this lane-concat copy.
            u = jnp.dot(patch, wu_ref[2 * ry + rx],
                        preferred_element_type=jnp.float32)                        # [M, Cu] f32
            ssum = ssum + jnp.sum(u, axis=0, keepdims=True)
            ssq = ssq + jnp.sum(u * u, axis=0, keepdims=True)
            us.append(u)

    # ---- InstanceNorm2d (affine=False): per-(n, c) stats over all H*W = 4*M positions ----
    mean = ssum * inv_hw                                                           # [1, Cu]
    var = jnp.maximum(ssq * inv_hw - mean * mean, 0.0)                             # guard cancellation
    inv_std = jax.lax.rsqrt(var + EPS)
    normed = [((u - mean) * inv_std).astype(out_ref.dtype) for u in us]
    # Single lane-packed bf16 store: parities along lanes -> [M, 4*Cu].
    out_ref[0] = jnp.concatenate(normed, axis=-1)


def unet_innermost_block(x_nchw, w_down, w_up):
    """Forward of UNetSkipConnectionBlock(innermost=True).

    x_nchw: [N, input_nc, H, W]
    w_down: [inner_nc, input_nc, 4, 4]  (PyTorch Conv2d weight layout, OIHW)
    w_up:   [inner_nc, outer_nc, 4, 4]  (PyTorch ConvTranspose2d weight layout, IOHW)
    returns [N, input_nc + outer_nc, H, W]
    """
    N, Cin, H, W = x_nchw.shape
    Cd = w_down.shape[0]                 # inner_nc
    Cu = w_up.shape[1]                   # outer_nc
    assert H % 2 == 0 and W % 2 == 0
    Ho, Wo = H // 2, W // 2
    M = Ho * Wo

    # PyTorch's LeakyReLU(0.2, inplace=True) mutates x before torch.cat, so the skip
    # branch carries leaky_relu(x, 0.2); it also feeds the down conv.
    x_act = jnp.where(x_nchw > 0, x_nchw, LEAKY_SLOPE * x_nchw)                    # f32, NCHW

    # ---- im2col for the down conv (built once by XLA, stored in bf16) ----
    xp = jnp.pad(x_act, ((0, 0), (0, 0), (1, 1), (1, 1)))
    slabs = [xp[:, :, kh:kh + 2 * Ho:2, kw:kw + 2 * Wo:2]                          # [N, Cin, Ho, Wo]
             for kh in range(4) for kw in range(4)]
    patches = jnp.stack(slabs, axis=1)                                             # [N, 16, Cin, Ho, Wo]
    patches = patches.transpose(0, 3, 4, 1, 2).reshape(N, M, 16 * Cin)
    patches = patches.astype(jnp.bfloat16)                                         # halves HBM traffic

    # ---- pack weights for the fat matmuls (K order must match the patch build) ----
    wd_packed = (jnp.transpose(w_down, (2, 3, 1, 0))                               # [4,4,Cin,Cd]
                 .reshape(16 * Cin, Cd).astype(jnp.bfloat16))
    wu_blocks = []
    for ry in range(2):
        for rx in range(2):
            blk = jnp.concatenate(
                [w_up[:, :, kh, kw]                                                # [Cd, Cu]
                 for (kh, _) in _TAPS[ry] for (kw, _) in _TAPS[rx]], axis=0)       # [4*Cd, Cu]
            wu_blocks.append(blk)
    wu_packed = jnp.stack(wu_blocks, axis=0).astype(jnp.bfloat16)                  # [4, 4*Cd, Cu]

    # ---- per-step VMEM working-set estimate -> generation-safe vmem limit (<= 64 MiB, v7x) ----
    ws = (2 * M * 16 * Cin * 2                       # double-buffered patches block (bf16)
          + 2 * M * 4 * Cu * 2                       # double-buffered output block (bf16)
          + (16 * Cin * Cd + 16 * Cd * Cu) * 2 * 2   # weight blocks (bf16, double-buffered)
          + (Ho + 2) * (Wo + 2) * Cd * 2             # dpad scratch (bf16)
          + 3 * (Ho + 2) * Wo * Cd * 2               # column-shifted slabs (bf16)
          + M * 4 * Cd * 2                           # per-parity concatenated patch (bf16)
          + M * Cd * 4 + 4 * M * Cu * 4)             # down result + 4 held parity results (f32)
    vmem_limit = int(min(max(2 * ws + (8 << 20), 16 << 20), 64 << 20))

    up = pl.pallas_call(
        _unet_inner_kernel,
        out_shape=jax.ShapeDtypeStruct((N, M, 4 * Cu), jnp.bfloat16),
        grid_spec=pltpu.PrefetchScalarGridSpec(
            num_scalar_prefetch=0,
            grid=(N,),
            in_specs=[
                pl.BlockSpec((1, M, 16 * Cin), lambda n: (n, 0, 0)),
                pl.BlockSpec((16 * Cin, Cd), lambda n: (0, 0)),
                pl.BlockSpec((4, 4 * Cd, Cu), lambda n: (0, 0, 0)),
            ],
            out_specs=pl.BlockSpec((1, M, 4 * Cu), lambda n: (n, 0, 0)),
            scratch_shapes=[pltpu.VMEM((Ho + 2, Wo + 2, Cd), jnp.bfloat16)],
        ),
        compiler_params=pltpu.CompilerParams(
            dimension_semantics=("parallel",),      # batch split across TCs (v7x megacore)
            vmem_limit_bytes=vmem_limit,
        ),
    )(patches, wd_packed, wu_packed)

    # ---- parity de-interleave of the up branch + concat skip (single fused XLA copy pass) ----
    u = up.astype(jnp.float32).reshape(N, Ho, Wo, 2, 2, Cu)                        # [n,h,w,ry,rx,c]
    u = u.transpose(0, 5, 1, 3, 2, 4).reshape(N, Cu, H, W)                         # [n,c,2h+ry,2w+rx]
    return jnp.concatenate([x_act, u], axis=1)                                     # NCHW output


def _reference_forward(x_nchw, w_down, w_up):
    """Pure-JAX (lax.conv) reference of the same torch forward, for verification."""
    x_act = jnp.where(x_nchw > 0, x_nchw, LEAKY_SLOPE * x_nchw)
    d = jax.lax.conv_general_dilated(
        x_act, w_down, window_strides=(2, 2), padding=((1, 1), (1, 1)),
        dimension_numbers=('NCHW', 'OIHW', 'NCHW'))
    r = jnp.maximum(d, 0.0)
    w_t = jnp.transpose(jnp.flip(w_up, axis=(2, 3)), (1, 0, 2, 3))   # -> OIHW, spatially flipped
    u = jax.lax.conv_general_dilated(
        r, w_t, window_strides=(1, 1), padding=((2, 2), (2, 2)),
        lhs_dilation=(2, 2), dimension_numbers=('NCHW', 'OIHW', 'NCHW'))
    mean = jnp.mean(u, axis=(2, 3), keepdims=True)
    var = jnp.mean((u - mean) ** 2, axis=(2, 3), keepdims=True)
    un = (u - mean) / jnp.sqrt(var + EPS)
    return jnp.concatenate([x_act, un], axis=1)


if __name__ == "__main__":
    key = jax.random.PRNGKey(0)
    k_x, k_wd, k_wu = jax.random.split(key, 3)

    N, H, W = 2, 16, 16
    outer_nc, inner_nc = 4, 8
    input_nc = outer_nc  # PyTorch default: input_nc = outer_nc

    x = jax.random.normal(k_x, (N, input_nc, H, W), dtype=jnp.float32)
    w_down = 0.1 * jax.random.normal(k_wd, (inner_nc, input_nc, 4, 4), dtype=jnp.float32)
    w_up = 0.1 * jax.random.normal(k_wu, (inner_nc, outer_nc, 4, 4), dtype=jnp.float32)

    out = jax.jit(unet_innermost_block)(x, w_down, w_up)
    out = jax.block_until_ready(out)

    assert out.shape == (N, input_nc + outer_nc, H, W), out.shape
    ref = _reference_forward(x, w_down, w_up)
    max_err = float(jnp.max(jnp.abs(out - ref)))
    # bf16 matmul operands + bf16 kernel output storage (fp32 accumulation) => bf16-level tolerance.
    assert max_err < 8e-2, f"max abs error vs reference: {max_err}"
    print("KERNEL_OK")
</pallas_src>

<mosaic_0001>
module attributes {stable_mosaic.version = 11 : i64} {
  func.func @_unet_inner_kernel(%arg0: i32, %arg1: memref<1x64x64xbf16, #tpu.memory_space<vmem>>, %arg2: memref<64x8xbf16, #tpu.memory_space<vmem>>, %arg3: memref<4x32x4xbf16, #tpu.memory_space<vmem>>, %arg4: memref<1x64x16xbf16, #tpu.memory_space<vmem>>, %arg5: memref<10x10x8xbf16, #tpu.memory_space<vmem>>) attributes {dimension_semantics = [#tpu.dimension_semantics<parallel>], iteration_bounds = array<i64: 2>, scalar_prefetch = 0 : i64, scratch_operands = 1 : i64, tpu.core_type = #tpu.core_type<tc>, window_params = [{transform_indices = @transform_0, window_bounds = array<i64: 1, 64, 64>}, {pipeline_mode = #tpu.pipeline_mode<synchronous>, transform_indices = @transform_1, window_bounds = array<i64: 64, 8>}, {pipeline_mode = #tpu.pipeline_mode<synchronous>, transform_indices = @transform_2, window_bounds = array<i64: 4, 32, 4>}, {transform_indices = @transform_3, window_bounds = array<i64: 1, 64, 16>}]} {
    %c0 = arith.constant 0 : index
    %c0_0 = arith.constant 0 : index
    %c0_1 = arith.constant 0 : index
    %0 = vector.load %arg1[%c0, %c0_0, %c0_1] : memref<1x64x64xbf16, #tpu.memory_space<vmem>>, vector<1x64x64xbf16>
    %1 = vector.shape_cast %0 : vector<1x64x64xbf16> to vector<64x64xbf16>
    %c0_2 = arith.constant 0 : index
    %c0_3 = arith.constant 0 : index
    %2 = vector.load %arg2[%c0_2, %c0_3] : memref<64x8xbf16, #tpu.memory_space<vmem>>, vector<64x8xbf16>
    %cst = arith.constant dense<0.000000e+00> : vector<64x8xf32>
    %3 = tpu.matmul %1, %2, %cst {dimension_numbers = #tpu.dot_dimension_numbers<[1], [0], [0], [1], [0, 0, 1, 1], [], []>} : vector<64x64xbf16>, vector<64x8xbf16>, vector<64x8xf32> -> vector<64x8xf32>
    %cst_4 = arith.constant 0.000000e+00 : bf16
    %4 = vector.broadcast %cst_4 : bf16 to vector<1x10x8xbf16>
    %cst_5 = arith.constant 0.000000e+00 : bf16
    %5 = vector.broadcast %cst_5 : bf16 to vector<8x1x8xbf16>
    %c0_6 = arith.constant 0 : index
    %c0_7 = arith.constant 0 : index
    %c0_8 = arith.constant 0 : index
    %6 = vector.load %arg5[%c0_6, %c0_7, %c0_8] : memref<10x10x8xbf16, #tpu.memory_space<vmem>>, vector<1x10x8xbf16>
    tpu.vector_store %arg5[%c0_6, %c0_7, %c0_8], %4 {strides = array<i32>} : memref<10x10x8xbf16, #tpu.memory_space<vmem>>, vector<1x10x8xbf16>,
    %c9 = arith.constant 9 : index
    %c0_9 = arith.constant 0 : index
    %c0_10 = arith.constant 0 : index
    %7 = vector.load %arg5[%c9, %c0_9, %c0_10] : memref<10x10x8xbf16, #tpu.memory_space<vmem>>, vector<1x10x8xbf16>
    tpu.vector_store %arg5[%c9, %c0_9, %c0_10], %4 {strides = array<i32>} : memref<10x10x8xbf16, #tpu.memory_space<vmem>>, vector<1x10x8xbf16>,
    %c1 = arith.constant 1 : index
    %c0_11 = arith.constant 0 : index
    %c0_12 = arith.constant 0 : index
    %8 = vector.load %arg5[%c1, %c0_11, %c0_12] : memref<10x10x8xbf16, #tpu.memory_space<vmem>>, vector<8x1x8xbf16>
    tpu.vector_store %arg5[%c1, %c0_11, %c0_12], %5 {strides = array<i32>} : memref<10x10x8xbf16, #tpu.memory_space<vmem>>, vector<8x1x8xbf16>,
    %c1_13 = arith.constant 1 : index
    %c9_14 = arith.constant 9 : index
    %c0_15 = arith.constant 0 : index
    %9 = vector.load %arg5[%c1_13, %c9_14, %c0_15] : memref<10x10x8xbf16, #tpu.memory_space<vmem>>, vector<8x1x8xbf16>
    tpu.vector_store %arg5[%c1_13, %c9_14, %c0_15], %5 {strides = array<i32>} : memref<10x10x8xbf16, #tpu.memory_space<vmem>>, vector<8x1x8xbf16>,
    %cst_16 = arith.constant 0.000000e+00 : f32
    %10 = vector.broadcast %cst_16 : f32 to vector<64x8xf32>
    %11 = arith.maximumf %3, %10 : vector<64x8xf32>
    %12 = vector.shape_cast %11 : vector<64x8xf32> to vector<8x8x8xf32>
    %13 = arith.truncf %12 : vector<8x8x8xf32> to vector<8x8x8xbf16>
    %c1_17 = arith.constant 1 : index
    %c1_18 = arith.constant 1 : index
    %c0_19 = arith.constant 0 : index
    %14 = vector.load %arg5[%c1_17, %c1_18, %c0_19] : memref<10x10x8xbf16, #tpu.memory_space<vmem>>, vector<8x8x8xbf16>
    tpu.vector_store %arg5[%c1_17, %c1_18, %c0_19], %13 {strides = array<i32>} : memref<10x10x8xbf16, #tpu.memory_space<vmem>>, vector<8x8x8xbf16>,
    %c0_20 = arith.constant 0 : index
    %c0_21 = arith.constant 0 : index
    %c0_22 = arith.constant 0 : index
    %15 = vector.load %arg5[%c0_20, %c0_21, %c0_22] : memref<10x10x8xbf16, #tpu.memory_space<vmem>>, vector<10x10x8xbf16>
    %16 = vector.extract_strided_slice %15 {offsets = [0, 0, 0], sizes = [10, 8, 8], strides = [1, 1, 1]} : vector<10x10x8xbf16> to vector<10x8x8xbf16>
    %17 = vector.extract_strided_slice %15 {offsets = [0, 1, 0], sizes = [10, 8, 8], strides = [1, 1, 1]} : vector<10x10x8xbf16> to vector<10x8x8xbf16>
    %18 = vector.extract_strided_slice %15 {offsets = [0, 2, 0], sizes = [10, 8, 8], strides = [1, 1, 1]} : vector<10x10x8xbf16> to vector<10x8x8xbf16>
    %cst_23 = arith.constant 0.000000e+00 : f32
    %19 = vector.broadcast %cst_23 : f32 to vector<1x4xf32>
    %cst_24 = arith.constant 0.000000e+00 : f32
    %20 = vector.broadcast %cst_24 : f32 to vector<1x4xf32>
    %21 = vector.extract_strided_slice %17 {offsets = [1, 0, 0], sizes = [8, 8, 8], strides = [1, 1, 1]} : vector<10x8x8xbf16> to vector<8x8x8xbf16>
    %22 = vector.shape_cast %21 : vector<8x8x8xbf16> to vector<64x8xbf16>
    %23 = vector.extract_strided_slice %16 {offsets = [1, 0, 0], sizes = [8, 8, 8], strides = [1, 1, 1]} : vector<10x8x8xbf16> to vector<8x8x8xbf16>
    %24 = vector.shape_cast %23 : vector<8x8x8xbf16> to vector<64x8xbf16>
    %25 = vector.extract_strided_slice %17 {offsets = [0, 0, 0], sizes = [8, 8, 8], strides = [1, 1, 1]} : vector<10x8x8xbf16> to vector<8x8x8xbf16>
    %26 = vector.shape_cast %25 : vector<8x8x8xbf16> to vector<64x8xbf16>
    %27 = vector.extract_strided_slice %16 {offsets = [0, 0, 0], sizes = [8, 8, 8], strides = [1, 1, 1]} : vector<10x8x8xbf16> to vector<8x8x8xbf16>
    %28 = vector.shape_cast %27 : vector<8x8x8xbf16> to vector<64x8xbf16>
    %29 = tpu.concatenate %22, %24, %26, %28 in 1 : vector<64x8xbf16>, vector<64x8xbf16>, vector<64x8xbf16>, vector<64x8xbf16> -> vector<64x32xbf16>
    %c0_25 = arith.constant 0 : index
    %c0_26 = arith.constant 0 : index
    %c0_27 = arith.constant 0 : index
    %30 = vector.load %arg3[%c0_25, %c0_26, %c0_27] : memref<4x32x4xbf16, #tpu.memory_space<vmem>>, vector<1x32x4xbf16>
    %31 = vector.shape_cast %30 : vector<1x32x4xbf16> to vector<32x4xbf16>
    %cst_28 = arith.constant dense<0.000000e+00> : vector<64x4xf32>
    %32 = tpu.matmul %29, %31, %cst_28 {dimension_numbers = #tpu.dot_dimension_numbers<[1], [0], [0], [1], [0, 0, 1, 1], [], []>} : vector<64x32xbf16>, vector<32x4xbf16>, vector<64x4xf32> -> vector<64x4xf32>
    %cst_29 = arith.constant dense<0.000000e+00> : vector<4xf32>
    %33 = vector.multi_reduction <add>, %32, %cst_29 [0] : vector<64x4xf32> to vector<4xf32>
    %34 = vector.shape_cast %33 : vector<4xf32> to vector<1x4xf32>
    %35 = arith.addf %19, %34 : vector<1x4xf32>
    %36 = arith.mulf %32, %32 : vector<64x4xf32>
    %cst_30 = arith.constant dense<0.000000e+00> : vector<4xf32>
    %37 = vector.multi_reduction <add>, %36, %cst_30 [0] : vector<64x4xf32> to vector<4xf32>
    %38 = vector.shape_cast %37 : vector<4xf32> to vector<1x4xf32>
    %39 = arith.addf %20, %38 : vector<1x4xf32>
    %40 = vector.extract_strided_slice %17 {offsets = [1, 0, 0], sizes = [8, 8, 8], strides = [1, 1, 1]} : vector<10x8x8xbf16> to vector<8x8x8xbf16>
    %41 = vector.shape_cast %40 : vector<8x8x8xbf16> to vector<64x8xbf16>
    %42 = vector.extract_strided_slice %18 {offsets = [1, 0, 0], sizes = [8, 8, 8], strides = [1, 1, 1]} : vector<10x8x8xbf16> to vector<8x8x8xbf16>
    %43 = vector.shape_cast %42 : vector<8x8x8xbf16> to vector<64x8xbf16>
    %44 = vector.extract_strided_slice %17 {offsets = [0, 0, 0], sizes = [8, 8, 8], strides = [1, 1, 1]} : vector<10x8x8xbf16> to vector<8x8x8xbf16>
    %45 = vector.shape_cast %44 : vector<8x8x8xbf16> to vector<64x8xbf16>
    %46 = vector.extract_strided_slice %18 {offsets = [0, 0, 0], sizes = [8, 8, 8], strides = [1, 1, 1]} : vector<10x8x8xbf16> to vector<8x8x8xbf16>
    %47 = vector.shape_cast %46 : vector<8x8x8xbf16> to vector<64x8xbf16>
    %48 = tpu.concatenate %41, %43, %45, %47 in 1 : vector<64x8xbf16>, vector<64x8xbf16>, vector<64x8xbf16>, vector<64x8xbf16> -> vector<64x32xbf16>
    %c1_31 = arith.constant 1 : index
    %c0_32 = arith.constant 0 : index
    %c0_33 = arith.constant 0 : index
    %49 = vector.load %arg3[%c1_31, %c0_32, %c0_33] : memref<4x32x4xbf16, #tpu.memory_space<vmem>>, vector<1x32x4xbf16>
    %50 = vector.shape_cast %49 : vector<1x32x4xbf16> to vector<32x4xbf16>
    %cst_34 = arith.constant dense<0.000000e+00> : vector<64x4xf32>
    %51 = tpu.matmul %48, %50, %cst_34 {dimension_numbers = #tpu.dot_dimension_numbers<[1], [0], [0], [1], [0, 0, 1, 1], [], []>} : vector<64x32xbf16>, vector<32x4xbf16>, vector<64x4xf32> -> vector<64x4xf32>
    %cst_35 = arith.constant dense<0.000000e+00> : vector<4xf32>
    %52 = vector.multi_reduction <add>, %51, %cst_35 [0] : vector<64x4xf32> to vector<4xf32>
    %53 = vector.shape_cast %52 : vector<4xf32> to vector<1x4xf32>
    %54 = arith.addf %35, %53 : vector<1x4xf32>
    %55 = arith.mulf %51, %51 : vector<64x4xf32>
    %cst_36 = arith.constant dense<0.000000e+00> : vector<4xf32>
    %56 = vector.multi_reduction <add>, %55, %cst_36 [0] : vector<64x4xf32> to vector<4xf32>
    %57 = vector.shape_cast %56 : vector<4xf32> to vector<1x4xf32>
    %58 = arith.addf %39, %57 : vector<1x4xf32>
    %59 = vector.extract_strided_slice %17 {offsets = [1, 0, 0], sizes = [8, 8, 8], strides = [1, 1, 1]} : vector<10x8x8xbf16> to vector<8x8x8xbf16>
    %60 = vector.shape_cast %59 : vector<8x8x8xbf16> to vector<64x8xbf16>
    %61 = vector.extract_strided_slice %16 {offsets = [1, 0, 0], sizes = [8, 8, 8], strides = [1, 1, 1]} : vector<10x8x8xbf16> to vector<8x8x8xbf16>
    %62 = vector.shape_cast %61 : vector<8x8x8xbf16> to vector<64x8xbf16>
    %63 = vector.extract_strided_slice %17 {offsets = [2, 0, 0], sizes = [8, 8, 8], strides = [1, 1, 1]} : vector<10x8x8xbf16> to vector<8x8x8xbf16>
    %64 = vector.shape_cast %63 : vector<8x8x8xbf16> to vector<64x8xbf16>
    %65 = vector.extract_strided_slice %16 {offsets = [2, 0, 0], sizes = [8, 8, 8], strides = [1, 1, 1]} : vector<10x8x8xbf16> to vector<8x8x8xbf16>
    %66 = vector.shape_cast %65 : vector<8x8x8xbf16> to vector<64x8xbf16>
    %67 = tpu.concatenate %60, %62, %64, %66 in 1 : vector<64x8xbf16>, vector<64x8xbf16>, vector<64x8xbf16>, vector<64x8xbf16> -> vector<64x32xbf16>
    %c2 = arith.constant 2 : index
    %c0_37 = arith.constant 0 : index
    %c0_38 = arith.constant 0 : index
    %68 = vector.load %arg3[%c2, %c0_37, %c0_38] : memref<4x32x4xbf16, #tpu.memory_space<vmem>>, vector<1x32x4xbf16>
    %69 = vector.shape_cast %68 : vector<1x32x4xbf16> to vector<32x4xbf16>
    %cst_39 = arith.constant dense<0.000000e+00> : vector<64x4xf32>
    %70 = tpu.matmul %67, %69, %cst_39 {dimension_numbers = #tpu.dot_dimension_numbers<[1], [0], [0], [1], [0, 0, 1, 1], [], []>} : vector<64x32xbf16>, vector<32x4xbf16>, vector<64x4xf32> -> vector<64x4xf32>
    %cst_40 = arith.constant dense<0.000000e+00> : vector<4xf32>
    %71 = vector.multi_reduction <add>, %70, %cst_40 [0] : vector<64x4xf32> to vector<4xf32>
    %72 = vector.shape_cast %71 : vector<4xf32> to vector<1x4xf32>
    %73 = arith.addf %54, %72 : vector<1x4xf32>
    %74 = arith.mulf %70, %70 : vector<64x4xf32>
    %cst_41 = arith.constant dense<0.000000e+00> : vector<4xf32>
    %75 = vector.multi_reduction <add>, %74, %cst_41 [0] : vector<64x4xf32> to vector<4xf32>
    %76 = vector.shape_cast %75 : vector<4xf32> to vector<1x4xf32>
    %77 = arith.addf %58, %76 : vector<1x4xf32>
    %78 = vector.extract_strided_slice %17 {offsets = [1, 0, 0], sizes = [8, 8, 8], strides = [1, 1, 1]} : vector<10x8x8xbf16> to vector<8x8x8xbf16>
    %79 = vector.shape_cast %78 : vector<8x8x8xbf16> to vector<64x8xbf16>
    %80 = vector.extract_strided_slice %18 {offsets = [1, 0, 0], sizes = [8, 8, 8], strides = [1, 1, 1]} : vector<10x8x8xbf16> to vector<8x8x8xbf16>
    %81 = vector.shape_cast %80 : vector<8x8x8xbf16> to vector<64x8xbf16>
    %82 = vector.extract_strided_slice %17 {offsets = [2, 0, 0], sizes = [8, 8, 8], strides = [1, 1, 1]} : vector<10x8x8xbf16> to vector<8x8x8xbf16>
    %83 = vector.shape_cast %82 : vector<8x8x8xbf16> to vector<64x8xbf16>
    %84 = vector.extract_strided_slice %18 {offsets = [2, 0, 0], sizes = [8, 8, 8], strides = [1, 1, 1]} : vector<10x8x8xbf16> to vector<8x8x8xbf16>
    %85 = vector.shape_cast %84 : vector<8x8x8xbf16> to vector<64x8xbf16>
    %86 = tpu.concatenate %79, %81, %83, %85 in 1 : vector<64x8xbf16>, vector<64x8xbf16>, vector<64x8xbf16>, vector<64x8xbf16> -> vector<64x32xbf16>
    %c3 = arith.constant 3 : index
    %c0_42 = arith.constant 0 : index
    %c0_43 = arith.constant 0 : index
    %87 = vector.load %arg3[%c3, %c0_42, %c0_43] : memref<4x32x4xbf16, #tpu.memory_space<vmem>>, vector<1x32x4xbf16>
    %88 = vector.shape_cast %87 : vector<1x32x4xbf16> to vector<32x4xbf16>
    %cst_44 = arith.constant dense<0.000000e+00> : vector<64x4xf32>
    %89 = tpu.matmul %86, %88, %cst_44 {dimension_numbers = #tpu.dot_dimension_numbers<[1], [0], [0], [1], [0, 0, 1, 1], [], []>} : vector<64x32xbf16>, vector<32x4xbf16>, vector<64x4xf32> -> vector<64x4xf32>
    %cst_45 = arith.constant dense<0.000000e+00> : vector<4xf32>
    %90 = vector.multi_reduction <add>, %89, %cst_45 [0] : vector<64x4xf32> to vector<4xf32>
    %91 = vector.shape_cast %90 : vector<4xf32> to vector<1x4xf32>
    %92 = arith.addf %73, %91 : vector<1x4xf32>
    %93 = arith.mulf %89, %89 : vector<64x4xf32>
    %cst_46 = arith.constant dense<0.000000e+00> : vector<4xf32>
    %94 = vector.multi_reduction <add>, %93, %cst_46 [0] : vector<64x4xf32> to vector<4xf32>
    %95 = vector.shape_cast %94 : vector<4xf32> to vector<1x4xf32>
    %96 = arith.addf %77, %95 : vector<1x4xf32>
    %cst_47 = arith.constant 3.906250e-03 : f32
    %97 = vector.broadcast %cst_47 : f32 to vector<1x4xf32>
    %98 = arith.mulf %92, %97 : vector<1x4xf32>
    %cst_48 = arith.constant 3.906250e-03 : f32
    %99 = vector.broadcast %cst_48 : f32 to vector<1x4xf32>
    %100 = arith.mulf %96, %99 : vector<1x4xf32>
    %101 = arith.mulf %98, %98 : vector<1x4xf32>
    %102 = arith.subf %100, %101 : vector<1x4xf32>
    %cst_49 = arith.constant 0.000000e+00 : f32
    %103 = vector.broadcast %cst_49 : f32 to vector<1x4xf32>
    %104 = arith.maximumf %102, %103 : vector<1x4xf32>
    %cst_50 = arith.constant 9.99999974E-6 : f32
    %105 = vector.broadcast %cst_50 : f32 to vector<1x4xf32>
    %106 = arith.addf %104, %105 : vector<1x4xf32>
    %107 = math.rsqrt %106 : vector<1x4xf32>
    %108 = vector.broadcast %98 : vector<1x4xf32> to vector<64x4xf32>
    %109 = arith.subf %32, %108 : vector<64x4xf32>
    %110 = vector.broadcast %107 : vector<1x4xf32> to vector<64x4xf32>
    %111 = arith.mulf %109, %110 : vector<64x4xf32>
    %112 = arith.truncf %111 : vector<64x4xf32> to vector<64x4xbf16>
    %113 = vector.broadcast %98 : vector<1x4xf32> to vector<64x4xf32>
    %114 = arith.subf %51, %113 : vector<64x4xf32>
    %115 = vector.broadcast %107 : vector<1x4xf32> to vector<64x4xf32>
    %116 = arith.mulf %114, %115 : vector<64x4xf32>
    %117 = arith.truncf %116 : vector<64x4xf32> to vector<64x4xbf16>
    %118 = vector.broadcast %98 : vector<1x4xf32> to vector<64x4xf32>
    %119 = arith.subf %70, %118 : vector<64x4xf32>
    %120 = vector.broadcast %107 : vector<1x4xf32> to vector<64x4xf32>
    %121 = arith.mulf %119, %120 : vector<64x4xf32>
    %122 = arith.truncf %121 : vector<64x4xf32> to vector<64x4xbf16>
    %123 = vector.broadcast %98 : vector<1x4xf32> to vector<64x4xf32>
    %124 = arith.subf %89, %123 : vector<64x4xf32>
    %125 = vector.broadcast %107 : vector<1x4xf32> to vector<64x4xf32>
    %126 = arith.mulf %124, %125 : vector<64x4xf32>
    %127 = arith.truncf %126 : vector<64x4xf32> to vector<64x4xbf16>
    %128 = tpu.concatenate %112, %117, %122, %127 in 1 : vector<64x4xbf16>, vector<64x4xbf16>, vector<64x4xbf16>, vector<64x4xbf16> -> vector<64x16xbf16>
    %c0_51 = arith.constant 0 : index
    %c0_52 = arith.constant 0 : index
    %c0_53 = arith.constant 0 : index
    %129 = vector.load %arg4[%c0_51, %c0_52, %c0_53] : memref<1x64x16xbf16, #tpu.memory_space<vmem>>, vector<1x64x16xbf16>
    %130 = vector.shape_cast %129 : vector<1x64x16xbf16> to vector<64x16xbf16>
    %131 = vector.shape_cast %128 : vector<64x16xbf16> to vector<1x64x16xbf16>
    tpu.vector_store %arg4[%c0_51, %c0_52, %c0_53], %131 {strides = array<i32>} : memref<1x64x16xbf16, #tpu.memory_space<vmem>>, vector<1x64x16xbf16>,
    return
  }
  func.func @transform_0(%arg0: i32) -> (i32, i32, i32) {
    %c0_i32 = arith.constant 0 : i32
    %c0_i32_0 = arith.constant 0 : i32
    %c0_i32_1 = arith.constant 0 : i32
    return %arg0, %c0_i32, %c0_i32_0 : i32, i32, i32
  }
  func.func @transform_1(%arg0: i32) -> (i32, i32) {
    %c0_i32 = arith.constant 0 : i32
    %c0_i32_0 = arith.constant 0 : i32
    %c0_i32_1 = arith.constant 0 : i32
    return %c0_i32, %c0_i32_0 : i32, i32
  }
  func.func @transform_2(%arg0: i32) -> (i32, i32, i32) {
    %c0_i32 = arith.constant 0 : i32
    %c0_i32_0 = arith.constant 0 : i32
    %c0_i32_1 = arith.constant 0 : i32
    %c0_i32_2 = arith.constant 0 : i32
    return %c0_i32, %c0_i32_0, %c0_i32_1 : i32, i32, i32
  }
  func.func @transform_3(%arg0: i32) -> (i32, i32, i32) {
    %c0_i32 = arith.constant 0 : i32
    %c0_i32_0 = arith.constant 0 : i32
    %c0_i32_1 = arith.constant 0 : i32
    return %arg0, %c0_i32, %c0_i32_0 : i32, i32, i32
  }
}

</mosaic_0001>

<bundles_post_ra>
// kernel: unet_innermost_block.1
= control target key start
LH: loop header
LB: loop body
LE: loop exit
PB: predicated region body
PF: predicated region fallthrough
CT: control target
= control target key end

     0   :  { %s2046_s12 = smov 0   ;;  %s2782_s0 = inlined_call_operand.vmem [shape: bf16[2,64,64], index: 0, kind: input, shape index: {}]   ;;  %s2783_s1 = inlined_call_operand.vmem [shape: bf16[64,8], index: 1, kind: input, shape index: {}]   ;;  %s2784_s2 = inlined_call_operand.vmem [shape: bf16[4,32,4], index: 2, kind: input, shape index: {}]   ;;  %s2785_s3 = inlined_call_operand.vmem [shape: bf16[2,64,16], index: 3, kind: output, shape index: {}]  }
   0x1 LB: > { %s1753_s13 = sadd.s32 4294967295, %s2018_s12   ;;  %p1757_p0 = scmp.ge.s32.totalorder %s2018_s12, 1  ;;  %s2018_s12 = sphi %s2046_s12, %s13_s12  }
   0x2   : > { %p137_p1 = scmp.lt.s32.totalorder %s2018_s12, 3 }
   0x4   : > { %p138_p2 = pnand %p1757_p0, %p137_p1 }
   0x5   : > { %v1985_v0 = vld [vmem:[%s2783_s1] sm:$0xff] (!%p138_p2)   ;;  %p161_p3 = scmp.lt.s32.totalorder (!%p138_p2), %s1753_s13, 1  ;;  %v1986_v1 = vld [vmem:[%s2783_s1 + $0x8] sm:$0xff] (!%p138_p2)   ;;  %vm232_vm0 = vcmask (!%p138_p2), 523264   ;;  %v1987_v2 = vld [vmem:[%s2783_s1 + $0x10] sm:$0xff] (!%p138_p2)   ;;  %vm310_vm1 = vcmask (!%p138_p2), 60416  }
   0x6   : > { %141 = sbr.rel (%p138_p2) target bundleno = 839 (0x347), region = 32  ;;  %1907 = vmatprep.subr.bf16.mxu0 (!%p138_p2), %v1985_v0  ;;  %v1988_v4 = vld [vmem:[%s2783_s1 + $0x18] sm:$0xff] (!%p138_p2)   ;;  %vm312_vm2 = vcmask (!%p138_p2), 57344   ;;  %vm319_vm3 = vsmask.f32 (!%p138_p2), 256  ;;  %v2020_v8 = vmov (!%p138_p2), 0  }
   0x7   : > { %1908 = vmatpush3.bf16.msra.mxu0 (!%p138_p2), %v1985_v0  ;;  %311 = vst.msk [vmem:[#allocation2] sm:$0xf] (!%p138_p2), %vm310_vm1, %v2020_v8  ;;  %315 = vst.msk [vmem:[#allocation2 + $0x48] sm:$0xf] (!%p138_p2), %vm310_vm1, %v2020_v8  ;;  %v327_v10 = vld [vmem:[#allocation2 + $0x18] sm:$0x1] (!%p138_p2) }
   0x8   : > { %1909 = vmatprep.subr.bf16.mxu0 (!%p138_p2), %v1986_v1  ;;  %313 = vst.msk [vmem:[#allocation2 + $0x4] sm:$0x1] (!%p138_p2), %vm312_vm2, %v2020_v8  ;;  %316 = vst.msk [vmem:[#allocation2 + $0x4c] sm:$0x1] (!%p138_p2), %vm312_vm2, %v2020_v8  ;;  %vm345_vm5 = vsmask.f32 (!%p138_p2), 7938 }
   0x9   : > { %vm2080_vm4 = vmand (!%p138_p2), %vm312_vm2, %vm319_vm3  ;;  %v353_v11 = vld [vmem:[#allocation2 + $0x1c] sm:$0x1] (!%p138_p2)  ;;  %v321_v14 = vld [vmem:[#allocation2 + $0x8] sm:$0x1] (!%p138_p2)  ;;  %vm561_vm8 = vsmask.f32 (!%p138_p2), 3328 }
   0xa   : > { %v328_v12 = vsel (!%p138_p2), %vm2080_vm4, 0, %v327_v10  ;;  %vm2087_vm6 = vmand (!%p138_p2), %vm312_vm2, %vm345_vm5  ;;  %v347_v15 = vld [vmem:[#allocation2 + $0xc] sm:$0x1] (!%p138_p2)  ;;  %v322_v17 = vsel (!%p138_p2), %vm2080_vm4, 0, %v321_v14  ;;  %v330_v19 = vld [vmem:[#allocation2 + $0x20] sm:$0x1] (!%p138_p2) }
   0xb   : > { %1910 = vmatpush3.bf16.msra.mxu0 (!%p138_p2), %v1986_v1  ;;  %329 = vst [vmem:[#allocation2 + $0x18] sm:$0x1] (!%p138_p2), %v328_v12  ;;  %v354_v16 = vsel (!%p138_p2), %vm2087_vm6, 0, %v353_v11  ;;  %v348_v18 = vsel (!%p138_p2), %vm2087_vm6, 0, %v347_v15  ;;  %323 = vst [vmem:[#allocation2 + $0x8] sm:$0x1] (!%p138_p2), %v322_v17 }
   0xc   : > { %1911 = vmatprep.subr.bf16.mxu0 (!%p138_p2), %v1987_v2  ;;  %355 = vst [vmem:[#allocation2 + $0x1c] sm:$0x1] (!%p138_p2), %v354_v16  ;;  %349 = vst [vmem:[#allocation2 + $0xc] sm:$0x1] (!%p138_p2), %v348_v18  ;;  %v331_v20 = vsel (!%p138_p2), %vm2080_vm4, 0, %v330_v19  ;;  %s2021_s30 = smov (!%p138_p2), 24  }
   0xd   : > { %s2797_s13 = smov (!%p161_p3, %s1753_s13), 1  ;;  %v356_v21 = vld [vmem:[#allocation2 + $0x24] sm:$0x1]  ;;  %v324_v22 = vld [vmem:[#allocation2 + $0x10] sm:$0x1]  ;;  %vm2107_vm7 = vmand %vm310_vm1, %vm345_vm5  ;;  %s2022_s6 = smov 8  }
   0xe   : > { %s1865_s20 = sshll.u32 %s2797_s13, 5  ;;  %332 = vst [vmem:[#allocation2 + $0x20] sm:$0x1] %v331_v20  ;;  %v357_v23 = vsel %vm2087_vm6, 0, %v356_v21  ;;  %v325_v24 = vsel %vm2080_vm4, 0, %v324_v22  ;;  %s2023_s11 = smov 16  }
   0xf   : > { %s165_s23 = scalar_lea.vmem %s2782_s0, %s1865_s20  ;;  %1912 = vmatpush3.bf16.msra.mxu0 %v1987_v2  ;;  %v350_v25 = vld [vmem:[#allocation2 + $0x14] sm:$0x1]  ;;  %358 = vst [vmem:[#allocation2 + $0x24] sm:$0x1] %v357_v23  ;;  %326 = vst [vmem:[#allocation2 + $0x10] sm:$0x1] %v325_v24  ;;  %s170_s25 = scalar_lea.vmem %s2785_s3, %s1865_s20 }
  0x10   : > { %v1989_v3 = vld [vmem:[%s165_s23] sm:$0xff]   ;;  %1913 = vmatprep.subr.bf16.mxu0 %v1988_v4  ;;  %v1990_v5 = vld [vmem:[%s165_s23 + $0x8] sm:$0xff]   ;;  %v1991_v6 = vld [vmem:[%s165_s23 + $0x10] sm:$0xff]   ;;  %v351_v26 = vsel %vm2087_vm6, 0, %v350_v25  ;;  %vm562_vm9 = vsmask.f32 7440 }
  0x11   : > { %1915 = vmatprep.mubr.msk.bf16.mxu0 %vm232_vm0, %v1989_v3  ;;  %v1992_v7 = vld [vmem:[%s165_s23 + $0x18] sm:$0xff]   ;;  %352 = vst [vmem:[#allocation2 + $0x14] sm:$0x1] %v351_v26  ;;  %v333_v32 = vld [vmem:[#allocation2 + $0x28] sm:$0x1]  ;;  %vm2204_vm10 = vmor %vm561_vm8, %vm562_vm9  ;;  %vm939_vm11 = vcmask 1042432  }
  0x12   : > { %v339_v28 = vld [vmem:[#allocation2 + $0x38] sm:$0x1]  ;;  %v365_v29 = vld [vmem:[#allocation2 + $0x3c] sm:$0x1]  ;;  %v359_v33 = vld [vmem:[#allocation2 + $0x2c] sm:$0x1] }
  0x13   : > { %1914 = vmatpush3.bf16.msra.mxu0 %v1988_v4  ;;  %v340_v30 = vsel %vm2080_vm4, 0, %v339_v28  ;;  %v366_v31 = vsel %vm2087_vm6, 0, %v365_v29  ;;  %v334_v34 = vsel %vm2080_vm4, 0, %v333_v32  ;;  %v360_v35 = vsel %vm2087_vm6, 0, %v359_v33  ;;  %v342_v36 = vld [vmem:[#allocation2 + $0x40] sm:$0x1] }
  0x14   : > { %341 = vst [vmem:[#allocation2 + $0x38] sm:$0x1] %v340_v30  ;;  %367 = vst [vmem:[#allocation2 + $0x3c] sm:$0x1] %v366_v31  ;;  %v368_v37 = vld [vmem:[#allocation2 + $0x44] sm:$0x1] }
  0x15   : > { %335 = vst [vmem:[#allocation2 + $0x28] sm:$0x1] %v334_v34  ;;  %361 = vst [vmem:[#allocation2 + $0x2c] sm:$0x1] %v360_v35  ;;  %v343_v38 = vsel %vm2080_vm4, 0, %v342_v36  ;;  %v369_v39 = vsel %vm2087_vm6, 0, %v368_v37 }
  0x16   : > { %1916 = vmatmul.mubr.msk.bf16.vlgmr.msra.gmra.mrb[0].mxu0 %vm232_vm0, %v1990_v5  ;;  %v336_v40 = vld [vmem:[#allocation2 + $0x30] sm:$0x1]  ;;  %v362_v41 = vld [vmem:[#allocation2 + $0x34] sm:$0x1]  ;;  %344 = vst [vmem:[#allocation2 + $0x40] sm:$0x1] %v343_v38 }
  0x17   : > { %1919 = vmatprep.mubr.msk.bf16.mxu0 %vm232_vm0, %v1991_v6  ;;  %370 = vst [vmem:[#allocation2 + $0x44] sm:$0x1] %v369_v39  ;;  %v337_v42 = vsel %vm2080_vm4, 0, %v336_v40  ;;  %v363_v43 = vsel %vm2087_vm6, 0, %v362_v41  ;;  %v2127_v44 = vld [vmem:[#allocation2] sm:$0xf] }
  0x18   : > { %338 = vst [vmem:[#allocation2 + $0x30] sm:$0x1] %v337_v42  ;;  %364 = vst [vmem:[#allocation2 + $0x34] sm:$0x1] %v363_v43  ;;  %v677_v50 = vshrl.u32 %v2127_v44, 16  ;;  %v680_v51 = vshll.u32 %v2127_v44, 16 }
  0x19   : > { %v505_v59 = vld [vmem:[#allocation2 + $0x18] sm:$0xf]  ;;  %v508_v60 = vld [vmem:[#allocation2 + $0x1c] sm:$0x1]  ;;  %v493_v4 = vld [vmem:[#allocation2 + $0x8] sm:$0xf] }
  0x1a   : > { %v2131_v63 = vrot.slane %v677_v50, 4  ;;  %v2133_v0 = vrot.slane %v680_v51, 5  ;;  %v496_v5 = vld [vmem:[#allocation2 + $0xc] sm:$0x1]  ;;  %v511_v16 = vld [vmem:[#allocation2 + $0x20] sm:$0xf] }
  0x1b   : > { %v514_v21 = vld [vmem:[#allocation2 + $0x24] sm:$0x1]  ;;  %v499_v30 = vld [vmem:[#allocation2 + $0x10] sm:$0xf]  ;;  %v502_v31 = vld [vmem:[#allocation2 + $0x14] sm:$0x1] }
  0x1c   : > { %v529_v50 = vld [vmem:[#allocation2 + $0x38] sm:$0xf]  ;;  %v532_v51 = vld [vmem:[#allocation2 + $0x3c] sm:$0x1]  ;;  %vm940_vm12 = vcmask 1046532   ;;  %vm757_vm14 = vcmask 64512  }
  0x1d   : > { %vm2306_vm13 = vmor %vm939_vm11, %vm940_vm12  ;;  %vm770_vm15 = vcmask 130048   ;;  %vm804_vm1 = vcmask 261120   ;;  %vm878_vm2 = vcmask 31744   ;;  %s2024_s21 = smov 4   ;;  %s2025_s22 = smov 12   ;;  %vm1652_vm3 = vcmask 97280  }
  0x1e   : > { %1920 = vmatmul.mubr.msk.bf16.gmra.mrb[4].mxu0 %vm232_vm0, %v1992_v7  ;;  %vm779_vm0 = vcmask 195584  }
  0xe9   : > { %v1917_v45 = vpop.f32.mrb[0].mxu0 }
  0xea   : > { %v373_v46 = vmax.f32 %v1917_v45, 0.0  ;;  %v279_v47 = vpop.f32.mrb[1].mxu0 }
  0xeb   : > { %v371_v48 = vmax.f32 %v279_v47, 0.0  ;;  %v1918_v49 = vpop.f32.mrb[2].mxu0 }
  0xec   : > { %v1869_v52 = vpack.c.bf16 %v373_v46, %v373_v46  ;;  %v374_v53 = vmax.f32 %v1918_v49, 0.0  ;;  %v282_v54 = vpop.f32.mrb[3].mxu0 }
  0xed   : > { %v1867_v55 = vpack.c.bf16 %v371_v48, %v371_v48  ;;  %v372_v56 = vmax.f32 %v282_v54, 0.0 }
  0xee   : > { %v428_v57 = vshrl.u32 %v1869_v52, 16  ;;  %v1870_v58 = vpack.c.bf16 %v374_v53, %v374_v53  ;;  %v431_v2 = vshll.u32 %v1869_v52, 16  ;;  %v517_v52 = vld [vmem:[#allocation2 + $0x28] sm:$0xf] }
  0xef   : > { %v412_v61 = vshrl.u32 %v1867_v55, 16  ;;  %v1868_v62 = vpack.c.bf16 %v372_v56, %v372_v56  ;;  %v415_v3 = vshll.u32 %v1867_v55, 16  ;;  %v2151_v55 = vld [vmem:[#allocation2 + $0x4] sm:$0x1] }
  0xf0   : > { %v430_v1 = vrot.slane %v428_v57, 7  ;;  %v436_v6 = vshrl.u32 %v1870_v58, 16  ;;  %v439_v8 = vshll.u32 %v1870_v58, 16  ;;  %v2002_v56 = vld [vmem:[%s2784_s2] sm:$0xff]  }
  0xf1   : > { %v414_v7 = vrot.slane %v412_v61, 7  ;;  %v420_v10 = vshrl.u32 %v1868_v62, 16  ;;  %v423_v11 = vshll.u32 %v1868_v62, 16  ;;  %v1921_v12 = vpop.f32.mrb[4].mxu0  ;;  %v683_v62 = vor.u32 %v2133_v0, %v2131_v63  ;;  %1923 = vmatprep.subr.bf16.mxu1 %v2002_v56 }
  0xf2   : > { %v433_v13 = vor.u32 %v431_v2, %v430_v1  ;;  %v434_v14 = vrot.slane %v430_v1, 4  ;;  %v438_v15 = vrot.slane %v436_v6, 7  ;;  %v377_v17 = vmax.f32 %v1921_v12, 0.0  ;;  %v295_v18 = vpop.f32.mrb[5].mxu0  ;;  %v535_v6 = vld [vmem:[#allocation2 + $0x40] sm:$0xf]  ;;  %1924 = vmatpush3.bf16.msra.mxu1 %v2002_v56 }
  0xf3   : > { %v417_v19 = vor.u32 %v415_v3, %v414_v7  ;;  %v418_v20 = vrot.slane %v414_v7, 4  ;;  %v422_v22 = vrot.slane %v420_v10, 7  ;;  %v375_v23 = vmax.f32 %v295_v18, 0.0  ;;  %v1922_v24 = vpop.f32.mrb[6].mxu0  ;;  %v538_v7 = vld [vmem:[#allocation2 + $0x44] sm:$0x1] }
  0xf4   : > { %v506_v25 = vsel %vm2107_vm7, %v433_v13, %v505_v59  ;;  %v509_v26 = vsel %vm2080_vm4, %v434_v14, %v508_v60  ;;  %v441_v28 = vor.u32 %v439_v8, %v438_v15  ;;  %v442_v29 = vrot.slane %v438_v15, 4  ;;  %v298_v32 = vpop.f32.mrb[7].mxu0  ;;  %v520_v59 = vld [vmem:[#allocation2 + $0x2c] sm:$0x1]  ;;  %v523_v8 = vld [vmem:[#allocation2 + $0x30] sm:$0xf] }
  0xf5   : > { %507 = vst [vmem:[#allocation2 + $0x18] sm:$0xf] %v506_v25  ;;  %510 = vst [vmem:[#allocation2 + $0x1c] sm:$0x1] %v509_v26  ;;  %v494_v33 = vsel %vm2107_vm7, %v417_v19, %v493_v4  ;;  %v497_v34 = vsel %vm2080_vm4, %v418_v20, %v496_v5  ;;  %v425_v35 = vor.u32 %v423_v11, %v422_v22  ;;  %v426_v36 = vrot.slane %v422_v22, 4 }
  0xf6   : > { %495 = vst [vmem:[#allocation2 + $0x8] sm:$0xf] %v494_v33  ;;  %498 = vst [vmem:[#allocation2 + $0xc] sm:$0x1] %v497_v34  ;;  %v512_v37 = vsel %vm2107_vm7, %v441_v28, %v511_v16  ;;  %v515_v38 = vsel %vm2080_vm4, %v442_v29, %v514_v21  ;;  %v1873_v39 = vpack.c.bf16 %v377_v17, %v377_v17  ;;  %v378_v43 = vmax.f32 %v1922_v24, 0.0 }
  0xf7   : > { %v1871_v40 = vpack.c.bf16 %v375_v23, %v375_v23  ;;  %513 = vst [vmem:[#allocation2 + $0x20] sm:$0xf] %v512_v37  ;;  %516 = vst [vmem:[#allocation2 + $0x24] sm:$0x1] %v515_v38  ;;  %v500_v41 = vsel %vm2107_vm7, %v425_v35, %v499_v30  ;;  %v503_v42 = vsel %vm2080_vm4, %v426_v36, %v502_v31  ;;  %v376_v45 = vmax.f32 %v298_v32, 0.0  ;;  %v2003_v31 = vld [vmem:[%s2784_s2 + $0x8] sm:$0xff]  }
  0xf8   : > { %501 = vst [vmem:[#allocation2 + $0x10] sm:$0xf] %v500_v41  ;;  %504 = vst [vmem:[#allocation2 + $0x14] sm:$0x1] %v503_v42  ;;  %v460_v46 = vshrl.u32 %v1873_v39, 16  ;;  %v463_v47 = vshll.u32 %v1873_v39, 16  ;;  %v1874_v53 = vpack.c.bf16 %v378_v43, %v378_v43  ;;  %1925 = vmatprep.subr.bf16.mxu1 %v2003_v31 }
  0xf9   : > { %v444_v48 = vshrl.u32 %v1871_v40, 16  ;;  %v447_v49 = vshll.u32 %v1871_v40, 16  ;;  %v1872_v54 = vpack.c.bf16 %v376_v45, %v376_v45  ;;  %v686_v1 = vshll.u32 %v2151_v55, 16  ;;  %v526_v17 = vld [vmem:[#allocation2 + $0x34] sm:$0x1]  ;;  %1926 = vmatpush3.bf16.msra.mxu1 %v2003_v31 }
  0xfa   : > { %v462_v57 = vrot.slane %v460_v46, 7  ;;  %v468_v60 = vshrl.u32 %v1874_v53, 16  ;;  %v471_v11 = vshll.u32 %v1874_v53, 16  ;;  %v2181_v29 = vrot.slane %v683_v62, 4  ;;  %v2004_v46 = vld [vmem:[%s2784_s2 + $0x20] sm:$0xff]  }
  0xfb   : > { %v446_v58 = vrot.slane %v444_v48, 7  ;;  %v452_v61 = vshrl.u32 %v1872_v54, 16  ;;  %v455_v13 = vshll.u32 %v1872_v54, 16  ;;  %v2183_v30 = vrot.slane %v686_v1, 5  ;;  %1947 = vmatprep.subr.bf16.mxu0 %v2004_v46 }
  0xfc   : > { %v465_v2 = vor.u32 %v463_v47, %v462_v57  ;;  %v466_v3 = vrot.slane %v462_v57, 4  ;;  %v470_v10 = vrot.slane %v468_v60, 7  ;;  %v2169_v18 = vld [vmem:[#allocation2 + $0x18] sm:$0xf]  ;;  %v2210_v39 = vld [vmem:[#allocation2 + $0x1c] sm:$0x1]  ;;  %1948 = vmatpush3.bf16.msra.mxu0 %v2004_v46 }
  0xfd   : > { %v449_v4 = vor.u32 %v447_v49, %v446_v58  ;;  %v450_v5 = vrot.slane %v446_v58, 4  ;;  %v454_v12 = vrot.slane %v452_v61, 7  ;;  %v2159_v14 = vld [vmem:[#allocation2 + $0x8] sm:$0xf]  ;;  %v2179_v28 = vld [vmem:[#allocation2 + $0xc] sm:$0x1] }
  0xfe   : > { %v530_v63 = vsel %vm2107_vm7, %v465_v2, %v529_v50  ;;  %v533_v0 = vsel %vm2080_vm4, %v466_v3, %v532_v51  ;;  %v473_v19 = vor.u32 %v471_v11, %v470_v10  ;;  %v474_v20 = vrot.slane %v470_v10, 4  ;;  %v2173_v24 = vld [vmem:[#allocation2 + $0x20] sm:$0xf]  ;;  %v2225_v56 = vld [vmem:[#allocation2 + $0x24] sm:$0x1] }
  0xff   : > { %v518_v15 = vsel %vm2107_vm7, %v449_v4, %v517_v52  ;;  %v521_v16 = vsel %vm2080_vm4, %v450_v5, %v520_v59  ;;  %531 = vst [vmem:[#allocation2 + $0x38] sm:$0xf] %v530_v63  ;;  %534 = vst [vmem:[#allocation2 + $0x3c] sm:$0x1] %v533_v0  ;;  %v457_v21 = vor.u32 %v455_v13, %v454_v12  ;;  %v458_v22 = vrot.slane %v454_v12, 4 }
 0x100   : > { %519 = vst [vmem:[#allocation2 + $0x28] sm:$0xf] %v518_v15  ;;  %522 = vst [vmem:[#allocation2 + $0x2c] sm:$0x1] %v521_v16  ;;  %v2171_v23 = vld [vmem:[#allocation2 + $0x10] sm:$0xf]  ;;  %v1794_v25 = vcombine.low %v2127_v44, %v2159_v14  ;;  %v536_v32 = vsel %vm2107_vm7, %v473_v19, %v535_v6  ;;  %v539_v33 = vsel %vm2080_vm4, %v474_v20, %v538_v7 }
 0x101   : > { %v1795_v26 = vcombine.low %v2171_v23, %v2169_v18  ;;  %v524_v34 = vsel %vm2107_vm7, %v457_v21, %v523_v8  ;;  %v527_v35 = vsel %vm2080_vm4, %v458_v22, %v526_v17  ;;  %v2196_v36 = vld [vmem:[#allocation2 + $0x14] sm:$0x1]  ;;  %537 = vst [vmem:[#allocation2 + $0x40] sm:$0xf] %v536_v32  ;;  %540 = vst [vmem:[#allocation2 + $0x44] sm:$0x1] %v539_v33 }
 0x102   : > { %525 = vst [vmem:[#allocation2 + $0x30] sm:$0xf] %v524_v34  ;;  %528 = vst [vmem:[#allocation2 + $0x34] sm:$0x1] %v527_v35  ;;  %749 = vrot.lane.b32.xlu0 %v1794_v25, %s2021_s30  ;;  %v1787_v37 = vcombine.low %v2169_v18, %v2173_v24  ;;  %v565_v9 = vshrl.u32 %v2159_v14, 16  ;;  %v568_v38 = vshll.u32 %v2159_v14, 16  ;;  %v689_v51 = vsel %vm2204_vm10, %v2181_v29, %v2183_v30 }
 0x103   : > { %751 = vrot.lane.b32.xlu1 %v1795_v26, %s2021_s30  ;;  %v579_v40 = vshrl.u32 %v2171_v23, 16  ;;  %v574_v41 = vshll.u32 %v2179_v28, 16  ;;  %v582_v42 = vshll.u32 %v2171_v23, 16  ;;  %v593_v43 = vshrl.u32 %v2169_v18, 16  ;;  %v2245_v15 = vld [vmem:[%s2784_s2 + $0x10] sm:$0xff]   ;;  %v2006_v25 = vld [vmem:[%s2784_s2 + $0x28] sm:$0xff]  }
 0x104   : > { %v596_v45 = vshll.u32 %v2169_v18, 16  ;;  %v567_v47 = vrot.slane %v565_v9, 4  ;;  %v570_v48 = vrot.slane %v568_v38, 5  ;;  %v588_v50 = vshll.u32 %v2196_v36, 16  ;;  %1935 = vmatprep.subr.bf16.mxu1 %v2245_v15  ;;  %1949 = vmatprep.subr.bf16.mxu0 %v2006_v25 }
 0x105   : > { %v581_v49 = vrot.slane %v579_v40, 4  ;;  %v584_v52 = vrot.slane %v582_v42, 5  ;;  %v595_v53 = vrot.slane %v593_v43, 4  ;;  %v1786_v57 = vcombine.low %v2159_v14, %v2171_v23  ;;  %1950 = vmatpush3.bf16.msra.mxu0 %v2006_v25 }
 0x106   : > { %v598_v54 = vrot.slane %v596_v45, 5  ;;  %724 = vrot.lane.b32.xlu0 %v1787_v37, %s2022_s6  ;;  %v571_v58 = vor.u32 %v570_v48, %v567_v47  ;;  %v602_v60 = vshll.u32 %v2210_v39, 16  ;;  %v607_v61 = vshrl.u32 %v2173_v24, 16  ;;  %v2253_v21 = vld [vmem:[#allocation2 + $0x38] sm:$0xf] }
 0x107   : > { %v2230_v59 = vld [vmem:[#allocation2 + $0x28] sm:$0xf]  ;;  %v576_v62 = vrot.slane %v574_v41, 5  ;;  %v585_v1 = vor.u32 %v584_v52, %v581_v49  ;;  %v610_v3 = vshll.u32 %v2173_v24, 16  ;;  %v590_v5 = vrot.slane %v588_v50, 5 }
 0x108   : > { %v599_v2 = vor.u32 %v598_v54, %v595_v53  ;;  %v572_v4 = vrot.slane %v571_v58, 4  ;;  %v609_v6 = vrot.slane %v607_v61, 4  ;;  %v616_v7 = vshll.u32 %v2225_v56, 16  ;;  %v2255_v22 = vld [vmem:[#allocation2 + $0x2c] sm:$0x1] }
 0x109   : > { %v2236_v8 = vld [vmem:[#allocation2 + $0x30] sm:$0xf]  ;;  %v586_v10 = vrot.slane %v585_v1, 4  ;;  %v604_v12 = vrot.slane %v602_v60, 5  ;;  %v621_v13 = vshrl.u32 %v2230_v59, 16  ;;  %v612_v0 = vrot.slane %v610_v3, 5 }
 0x10a   : > { %v600_v11 = vrot.slane %v599_v2, 4  ;;  %722 = vrot.lane.b32.xlu0 %v1786_v57, %s2022_s6  ;;  %v577_v63 = vsel %vm2204_vm10, %v572_v4, %v576_v62  ;;  %v1788_v17 = vcombine.low %v2230_v59, %v2236_v8  ;;  %v618_v31 = vrot.slane %v616_v7, 5  ;;  %v2262_v32 = vld [vmem:[#allocation2 + $0x34] sm:$0x1]  ;;  %v2273_v42 = vld [vmem:[#allocation2 + $0x40] sm:$0xf] }
 0x10b   : > { %v1790_v16 = vcombine.low %v689_v51, %v577_v63  ;;  %v591_v19 = vsel %vm2204_vm10, %v586_v10, %v590_v5  ;;  %v613_v30 = vor.u32 %v612_v0, %v609_v6  ;;  %v623_v33 = vrot.slane %v621_v13, 4  ;;  %v2278_v49 = vld [vmem:[#allocation2 + $0x3c] sm:$0x1] }
 0x10c   : > { %v605_v20 = vsel %vm2204_vm10, %v600_v11, %v604_v12  ;;  %v2260_v29 = vcombine.low %v577_v63, %v591_v19  ;;  %v624_v34 = vshll.u32 %v2230_v59, 16  ;;  %v635_v35 = vshrl.u32 %v2236_v8, 16  ;;  %v2297_v63 = vld [vmem:[#allocation2 + $0x48] sm:$0xf] }
 0x10d   : > { %v1791_v26 = vcombine.low %v591_v19, %v605_v20  ;;  %735 = vrot.lane.b32.xlu1 %v1790_v16, %s2023_s11  ;;  %v638_v37 = vshll.u32 %v2236_v8, 16  ;;  %v614_v9 = vrot.slane %v613_v30, 4  ;;  %v630_v38 = vshll.u32 %v2255_v22, 16 }
 0x10e   : > { %726 = vrot.lane.b32.xlu0 %v1788_v17, %s2022_s6  ;;  %v649_v40 = vshrl.u32 %v2253_v21, 16  ;;  %v652_v41 = vshll.u32 %v2253_v21, 16  ;;  %v626_v43 = vrot.slane %v624_v34, 5  ;;  %v637_v45 = vrot.slane %v635_v35, 4 }
 0x10f   : > { %v640_v46 = vrot.slane %v638_v37, 5  ;;  %v644_v47 = vshll.u32 %v2262_v32, 16  ;;  %v619_v48 = vsel %vm2204_vm10, %v614_v9, %v618_v31  ;;  %v658_v57 = vshll.u32 %v2278_v49, 16 }
 0x110   : > { %v651_v50 = vrot.slane %v649_v40, 4  ;;  %v654_v51 = vrot.slane %v652_v41, 5  ;;  %v627_v52 = vor.u32 %v626_v43, %v623_v33  ;;  %v2281_v53 = vcombine.low %v605_v20, %v619_v48  ;;  %v558_v33 = vld [vmem:[#allocation2 + $0x44] sm:$0x1] }
 0x111   : > { %737 = vrot.lane.b32.xlu1 %v1791_v26, %s2023_s11  ;;  %v641_v54 = vor.u32 %v640_v46, %v637_v45  ;;  %v1789_v58 = vcombine.low %v2253_v21, %v2273_v42  ;;  %v632_v62 = vrot.slane %v630_v38, 5  ;;  %v646_v2 = vrot.slane %v644_v47, 5 }
 0x112   : > { %v655_v60 = vor.u32 %v654_v51, %v651_v50  ;;  %v628_v61 = vrot.slane %v627_v52, 4  ;;  %v660_v4 = vrot.slane %v658_v57, 5  ;;  %v1805_v7 = vrot.slane %v2171_v23, 9 }
 0x113   : > { %v642_v1 = vrot.slane %v641_v54, 4  ;;  %v948_v13 = vrot.slane %v2196_v36, 5  ;;  %v1804_v16 = vrot.slane %v2159_v14, 9  ;;  %v944_v17 = vrot.slane %v2179_v28, 5 }
 0x114   : > { %v656_v3 = vrot.slane %v655_v60, 4  ;;  %v633_v5 = vsel %vm2204_vm10, %v628_v61, %v632_v62  ;;  %v1807_v19 = vrot.slane %v2173_v24, 9  ;;  %v956_v23 = vrot.slane %v2225_v56, 5  ;;  %v560_v60 = vld [vmem:[#allocation2 + $0x4c] sm:$0x1] }
 0x115   : > { %728 = vrot.lane.b32.xlu1 %v1789_v58, %s2022_s6  ;;  %v647_v6 = vsel %vm2204_vm10, %v642_v1, %v646_v2  ;;  %v1792_v10 = vcombine.low %v619_v48, %v633_v5  ;;  %v1812_v36 = vrot.slane %v2127_v44, 9  ;;  %v977_v25 = vrot.slane %v2151_v55, 5 }
 0x116   : > { %v661_v11 = vsel %vm2204_vm10, %v656_v3, %v660_v4  ;;  %v2294_v12 = vcombine.low %v633_v5, %v647_v6  ;;  %v1175_v26 = vshrl.u32 %v2297_v63, 16  ;;  %v1796_v14 = vcombine.low %v2173_v24, %v2230_v59 }
 0x117   : > { %v1793_v0 = vcombine.low %v647_v6, %v661_v11  ;;  %739 = vrot.lane.b32.xlu0 %v1792_v10, %s2023_s11  ;;  %v949_v28 = vsel %vm2306_vm13, %v1805_v7, %v948_v13  ;;  %v1806_v56 = vrot.slane %v2169_v18, 9  ;;  %v952_v30 = vrot.slane %v2210_v39, 5 }
 0x118   : > { %v1797_v31 = vcombine.low %v2236_v8, %v2253_v21  ;;  %v1178_v44 = vshll.u32 %v2297_v63, 16  ;;  %v945_v55 = vsel %vm2306_vm13, %v1804_v16, %v944_v17  ;;  %v957_v24 = vsel %vm2306_vm13, %v1807_v19, %v956_v23 }
 0x119   : > { %741 = vrot.lane.b32.xlu1 %v1793_v0, %s2023_s11  ;;  %v663_v34 = vshrl.u32 %v2273_v42, 16  ;;  %v666_v18 = vshll.u32 %v2273_v42, 16  ;;  %v1813_v35 = vcombine.low %v945_v55, %v949_v28  ;;  %v978_v39 = vsel %vm2306_vm13, %v1812_v36, %v977_v25 }
 0x11a   : > { %v1177_v37 = vrot.slane %v1175_v26, 4  ;;  %v953_v9 = vsel %vm2306_vm13, %v1806_v56, %v952_v30  ;;  %v672_v41 = vshll.u32 %v558_v33, 16  ;;  %v1809_v45 = vrot.slane %v2236_v8, 9 }
 0x11b   : > { %753 = vrot.lane.b32.xlu0 %v1796_v14, %s2021_s30  ;;  %v665_v38 = vrot.slane %v663_v34, 4  ;;  %v668_v40 = vrot.slane %v666_v18, 5  ;;  %v1814_v43 = vcombine.low %v953_v9, %v957_v24  ;;  %v964_v46 = vrot.slane %v2262_v32, 5 }
 0x11c   : > { %v1180_v47 = vrot.slane %v1178_v44, 5  ;;  %v1811_v48 = vrot.slane %v2273_v42, 9  ;;  %v972_v50 = vrot.slane %v558_v33, 5  ;;  %v1817_v52 = vcombine.low %v978_v39, %v945_v55  ;;  %v2008_v39 = vld [vmem:[%s2784_s2 + $0x30] sm:$0xff]  }
 0x11d   : > { %755 = vrot.lane.b32.xlu1 %v1797_v31, %s2021_s30  ;;  %v669_v51 = vor.u32 %v668_v40, %v665_v38  ;;  %v1808_v54 = vrot.slane %v2230_v59, 9  ;;  %v960_v57 = vrot.slane %v2255_v22, 5  ;;  %v1810_v58 = vrot.slane %v2253_v21, 9 }
 0x11e   : > { %v968_v8 = vrot.slane %v2278_v49, 5  ;;  %v674_v61 = vrot.slane %v672_v41, 5  ;;  %v965_v62 = vsel %vm2306_vm13, %v1809_v45, %v964_v46  ;;  %v1818_v1 = vcombine.low %v949_v28, %v953_v9 }
 0x11f   : > { %991 = vrot.lane.b32.xlu0 %v1813_v35, %s2022_s6  ;;  %v670_v32 = vrot.slane %v669_v51, 4  ;;  %v1181_v2 = vor.u32 %v1180_v47, %v1177_v37  ;;  %v1184_v3 = vshll.u32 %v560_v60, 16  ;;  %v973_v59 = vsel %vm2306_vm13, %v1811_v48, %v972_v50 }
 0x120   : > { %v961_v21 = vsel %vm2306_vm13, %v1808_v54, %v960_v57  ;;  %v969_v5 = vsel %vm2306_vm13, %v1810_v58, %v968_v8  ;;  %v1843_v17 = vrot.slane %v2297_v63, 9  ;;  %v1832_v36 = vcombine.low %v2273_v42, %v2297_v63 }
 0x121   : > { %993 = vrot.lane.b32.xlu1 %v1814_v43, %s2022_s6  ;;  %v675_v22 = vsel %vm2204_vm10, %v670_v32, %v674_v61  ;;  %v1815_v4 = vcombine.low %v961_v21, %v965_v62  ;;  %v1816_v6 = vcombine.low %v969_v5, %v973_v59  ;;  %v1182_v7 = vrot.slane %v1181_v2, 4  ;;  %v2009_v2 = vld [vmem:[%s2784_s2 + $0x38] sm:$0xff]  }
 0x122   : > { %v2353_v49 = vcombine.low %v661_v11, %v675_v22  ;;  %v1186_v10 = vrot.slane %v1184_v3, 5  ;;  %v1819_v13 = vcombine.low %v957_v24, %v961_v21  ;;  %v1820_v16 = vcombine.low %v965_v62, %v969_v5  ;;  %v2007_v24 = vld [vmem:[%s2784_s2 + $0x18] sm:$0xff]  }
 0x123   : > { %1004 = vrot.lane.b32.xlu0 %v1817_v52, %s2021_s30  ;;  %v1352_v11 = vrot.slane %v560_v60, 5  ;;  %vm1689_vm4 = vcmask 125952  }
 0x124   : > { %v1187_v0 = vsel %vm2204_vm10, %v1182_v7, %v1186_v10 }
 0x125   : > { %1006 = vrot.lane.b32.xlu1 %v1818_v1, %s2021_s30  ;;  %v1831_v19 = vcombine.low %v675_v22, %v1187_v0  ;;  %v1353_v23 = vsel %vm2306_vm13, %v1843_v17, %v1352_v11 }
 0x126   : > { %v1844_v27 = vcombine.low %v973_v59, %v1353_v23 }
 0x127   : > { %995 = vrot.lane.b32.xlu0 %v1815_v4, %s2022_s6 }
 0x129   : > { %997 = vrot.lane.b32.xlu1 %v1816_v6, %s2022_s6 }
 0x12b   : > { %1008 = vrot.lane.b32.xlu0 %v1819_v13, %s2021_s30 }
 0x12d   : > { %1010 = vrot.lane.b32.xlu1 %v1820_v16, %s2021_s30 }
 0x12f   : > { %1190 = vrot.lane.b32.xlu0 %v1831_v19, %s2023_s11 }
 0x131   : > { %1195 = vrot.lane.b32.xlu1 %v1832_v36, %s2021_s30 }
 0x133   : > { %1356 = vrot.lane.b32.xlu0 %v1844_v27, %s2021_s30 }
 0x174   : > { %v750_v25 = vpop.permute.xlu0 %749 }
 0x175   : > { %v752_v14 = vpop.permute.xlu1 %751 }
 0x178   : > { %v725_v26 = vpop.permute.xlu0 %724 }
 0x179   : > { %v763_v30 = vsel %vm757_vm14, %v2281_v53, %v725_v26 }
 0x17c   : > { %v723_v28 = vpop.permute.xlu0 %722 }
 0x17d   : > { %v760_v56 = vsel %vm757_vm14, %v2260_v29, %v723_v28 }
 0x17f   : > { %v736_v20 = vpop.permute.xlu1 %735 }
 0x180   : > { %v772_v42 = vsel %vm770_vm15, %v760_v56, %v736_v20  ;;  %v727_v33 = vpop.permute.xlu0 %726 }
 0x181   : > { %v781_v63 = vsel %vm779_vm0, %v772_v42, %v750_v25  ;;  %v766_v38 = vsel %vm757_vm14, %v2294_v12, %v727_v33 }
 0x182   : > { %1927 = vmatprep.mubr.msk.bf16.mxu1 %vm804_vm1, %v781_v63 }
 0x183   : > { %v738_v31 = vpop.permute.xlu1 %737 }
 0x184   : > { %v774_v44 = vsel %vm770_vm15, %v763_v30, %v738_v31  ;;  %v1197_v55 = vsel %vm770_vm15, %v760_v56, %v738_v31 }
 0x185   : > { %v783_v34 = vsel %vm779_vm0, %v774_v44, %v752_v14  ;;  %v1202_v18 = vsel %vm779_vm0, %v1197_v55, %v752_v14 }
 0x186   : > { %1928 = vmatmul.mubr.msk.bf16.vlgmr.msra.gmra.mrb[0].mxu1 %vm804_vm1, %v783_v34  ;;  %1951 = vmatprep.mubr.msk.bf16.mxu0 %vm804_vm1, %v1202_v18 }
 0x187   : > { %v729_v35 = vpop.permute.xlu1 %728  ;;  %1936 = vmatpush3.bf16.msra.mxu1 %v2245_v15 }
 0x188   : > { %1937 = vmatprep.subr.bf16.mxu1 %v2007_v24  ;;  %v769_v40 = vsel %vm757_vm14, %v2353_v49, %v729_v35 }
 0x189   : > { %v740_v37 = vpop.permute.xlu0 %739 }
 0x18a   : > { %v1198_v41 = vsel %vm770_vm15, %v763_v30, %v740_v37  ;;  %v776_v15 = vsel %vm770_vm15, %v766_v38, %v740_v37 }
 0x18b   : > { %v742_v9 = vpop.permute.xlu1 %741  ;;  %1938 = vmatpush3.bf16.msra.mxu1 %v2007_v24 }
 0x18c   : > { %1959 = vmatprep.subr.bf16.mxu1 %v2008_v39  ;;  %v778_v47 = vsel %vm770_vm15, %v769_v40, %v742_v9  ;;  %v1199_v50 = vsel %vm770_vm15, %v766_v38, %v742_v9 }
 0x18d   : > { %v754_v43 = vpop.permute.xlu0 %753 }
 0x18e   : > { %v785_v45 = vsel %vm779_vm0, %v776_v15, %v754_v43  ;;  %v1203_v46 = vsel %vm779_vm0, %v1198_v41, %v754_v43 }
 0x18f   : > { %v756_v48 = vpop.permute.xlu1 %755  ;;  %1931 = vmatprep.mubr.msk.bf16.mxu1 %vm804_vm1, %v785_v45  ;;  %1952 = vmatmul.mubr.msk.bf16.vlgmr.msra.gmra.mrb[8].mxu0 %vm804_vm1, %v1203_v46 }
 0x190   : > { %v787_v51 = vsel %vm779_vm0, %v778_v47, %v756_v48  ;;  %v1204_v52 = vsel %vm779_vm0, %v1199_v50, %v756_v48 }
 0x191   : > { %1932 = vmatmul.mubr.msk.bf16.gmra.mrb[4].mxu1 %vm804_vm1, %v787_v51  ;;  %1955 = vmatprep.mubr.msk.bf16.mxu0 %vm804_vm1, %v1204_v52  ;;  %v992_v54 = vpop.permute.xlu0 %991 }
 0x192   : > { %v1013_v57 = vsel %vm757_vm14, %v2260_v29, %v992_v54 }
 0x193   : > { %v994_v58 = vpop.permute.xlu1 %993  ;;  %v1020_v60 = vsel %vm770_vm15, %v1013_v57, %v736_v20  ;;  %v1358_v10 = vsel %vm770_vm15, %v1013_v57, %v738_v31 }
 0x194   : > { %v1015_v8 = vsel %vm757_vm14, %v2281_v53, %v994_v58 }
 0x195   : > { %v1005_v32 = vpop.permute.xlu0 %1004  ;;  %v1021_v62 = vsel %vm770_vm15, %v1015_v8, %v738_v31  ;;  %v1359_v11 = vsel %vm770_vm15, %v1015_v8, %v740_v37 }
 0x196   : > { %v1025_v61 = vsel %vm779_vm0, %v1020_v60, %v1005_v32 }
 0x197   : > { %v1007_v1 = vpop.permute.xlu1 %1006  ;;  %1939 = vmatprep.mubr.msk.bf16.mxu1 %vm804_vm1, %v1025_v61 }
 0x198   : > { %v1027_v29 = vsel %vm779_vm0, %v1021_v62, %v1007_v1  ;;  %v1362_v13 = vsel %vm779_vm0, %v1358_v10, %v1007_v1 }
 0x199   : > { %1940 = vmatmul.mubr.msk.bf16.vlgmr.msra.gmra.mrb[8].mxu1 %vm804_vm1, %v1027_v29  ;;  %v996_v3 = vpop.permute.xlu0 %995 }
 0x19a   : > { %1960 = vmatpush3.bf16.msra.mxu1 %v2008_v39  ;;  %v1017_v53 = vsel %vm757_vm14, %v2294_v12, %v996_v3 }
 0x19b   : > { %v998_v59 = vpop.permute.xlu1 %997  ;;  %1961 = vmatprep.subr.bf16.mxu1 %v2009_v2  ;;  %v1022_v4 = vsel %vm770_vm15, %v1017_v53, %v740_v37  ;;  %v1360_v23 = vsel %vm770_vm15, %v1017_v53, %v742_v9 }
 0x19c   : > { %v1019_v22 = vsel %vm757_vm14, %v2353_v49, %v998_v59 }
 0x19d   : > { %v1009_v21 = vpop.permute.xlu0 %1008  ;;  %v1023_v6 = vsel %vm770_vm15, %v1019_v22, %v742_v9 }
 0x19e   : > { %1962 = vmatpush3.bf16.msra.mxu1 %v2009_v2  ;;  %v1029_v5 = vsel %vm779_vm0, %v1022_v4, %v1009_v21  ;;  %v1363_v19 = vsel %vm779_vm0, %v1359_v11, %v1009_v21 }
 0x19f   : > { %v1011_v7 = vpop.permute.xlu1 %1010  ;;  %1943 = vmatprep.mubr.msk.bf16.mxu1 %vm804_vm1, %v1029_v5 }
 0x1a0   : > { %v1031_v12 = vsel %vm779_vm0, %v1023_v6, %v1011_v7  ;;  %v1364_v36 = vsel %vm779_vm0, %v1360_v23, %v1011_v7 }
 0x1a1   : > { %1944 = vmatmul.mubr.msk.bf16.gmra.mrb[12].mxu1 %vm804_vm1, %v1031_v12  ;;  %v1191_v49 = vpop.permute.xlu0 %1190 }
 0x1a2   : > { %1963 = vmatprep.mubr.msk.bf16.mxu1 %vm804_vm1, %v1362_v13  ;;  %v1201_v0 = vsel %vm770_vm15, %v769_v40, %v1191_v49  ;;  %v1361_v25 = vsel %vm770_vm15, %v1019_v22, %v1191_v49 }
 0x1a3   : > { %v1196_v16 = vpop.permute.xlu1 %1195 }
 0x1a4   : > { %v1206_v17 = vsel %vm779_vm0, %v1201_v0, %v1196_v16 }
 0x1a5   : > { %1956 = vmatmul.mubr.msk.bf16.gmra.mrb[12].mxu0 %vm804_vm1, %v1206_v17  ;;  %v1357_v27 = vpop.permute.xlu0 %1356 }
 0x1a6   : > { %v1366_v26 = vsel %vm779_vm0, %v1361_v25, %v1357_v27 }
 0x1a9   : > { %1964 = vmatmul.mubr.msk.bf16.vlgmr.msra.gmra.mrb[16].mxu1 %vm804_vm1, %v1363_v19 }
 0x1aa   : > { %1967 = vmatprep.mubr.msk.bf16.mxu1 %vm804_vm1, %v1364_v36 }
 0x1b1   : > { %1968 = vmatmul.mubr.msk.bf16.gmra.mrb[20].mxu1 %vm804_vm1, %v1366_v26 }
 0x259   : > { %v2445_v14 = vpop.f32.mrb[0].mxu1 }
 0x25a   : > { %v2447_v28 = vpop.f32.mrb[1].mxu1  ;;  %v903_v63 = vmul.f32 %v2445_v14, %v2445_v14  ;;  %v882_v55 = vsel %vm878_vm2, %v2445_v14, 0.0 }
 0x25b   : > { %v901_v56 = vmul.f32 %v2447_v28, %v2447_v28  ;;  %v2451_v20 = vpop.f32.mrb[2].mxu1  ;;  %v879_v30 = vsel %vm878_vm2, %v2447_v28, 0.0 }
 0x25c   : > { %v2453_v42 = vpop.f32.mrb[3].mxu1  ;;  %v904_v34 = vmul.f32 %v2451_v20, %v2451_v20  ;;  %v912_v37 = vsel %vm878_vm2, %v903_v63, 0.0  ;;  %v884_v9 = vsel %vm878_vm2, %v2451_v20, 0.0 }
 0x25d   : > { %v880_v31 = vsel %vm878_vm2, %v2453_v42, 0.0  ;;  %v902_v33 = vmul.f32 %v2453_v42, %v2453_v42  ;;  %v909_v24 = vsel %vm878_vm2, %v901_v56, 0.0 }
 0x25e   : > { %v881_v44 = vadd.f32 %v880_v31, %v879_v30  ;;  %v914_v41 = vsel %vm878_vm2, %v904_v34, 0.0 }
 0x25f   : > { %v910_v18 = vsel %vm878_vm2, %v902_v33, 0.0 }
 0x260   : > { %v883_v35 = vadd.f32 %v882_v55, %v881_v44  ;;  %v911_v39 = vadd.f32 %v910_v18, %v909_v24 }
 0x262   : > { %v913_v38 = vadd.f32 %v912_v37, %v911_v39  ;;  %v885_v40 = vadd.f32 %v884_v9, %v883_v35  ;;  %v2473_v43 = vpop.f32.mrb[8].mxu0 }
 0x263   : > { %v2475_v15 = vpop.f32.mrb[9].mxu0  ;;  %v1300_v51 = vsel %vm878_vm2, %v2473_v43, 0.0  ;;  %v1321_v52 = vmul.f32 %v2473_v43, %v2473_v43 }
 0x264   : > { %v2477_v45 = vpop.f32.mrb[4].mxu1  ;;  %v915_v46 = vadd.f32 %v914_v41, %v913_v38  ;;  %v1319_v47 = vmul.f32 %v2475_v15, %v2475_v15  ;;  %v2481_v48 = vpop.f32.mrb[10].mxu0  ;;  %v1297_v8 = vsel %vm878_vm2, %v2475_v15, 0.0 }
 0x265   : > { %v2483_v50 = vpop.f32.mrb[5].mxu1  ;;  %v2489_v54 = vpop.f32.mrb[11].mxu0  ;;  %v890_v61 = vsel %vm878_vm2, %v2477_v45, 0.0  ;;  %v907_v2 = vmul.f32 %v2477_v45, %v2477_v45  ;;  %v1322_v59 = vmul.f32 %v2481_v48, %v2481_v48  ;;  %v1330_v10 = vsel %vm878_vm2, %v1321_v52, 0.0 }
 0x266   : > { %v886_v57 = vsel %vm878_vm2, %v2483_v50, 0.0  ;;  %v2493_v58 = vpop.f32.mrb[6].mxu1  ;;  %v1298_v60 = vsel %vm878_vm2, %v2489_v54, 0.0  ;;  %v1320_v32 = vmul.f32 %v2489_v54, %v2489_v54  ;;  %v905_v3 = vmul.f32 %v2483_v50, %v2483_v50 }
 0x267   : > { %v2503_v62 = vpop.f32.mrb[7].mxu1  ;;  %v1299_v1 = vadd.f32 %v1298_v60, %v1297_v8  ;;  %v887_v29 = vadd.f32 %v886_v57, %v885_v40  ;;  %v1327_v53 = vsel %vm878_vm2, %v1319_v47, 0.0  ;;  %v1302_v12 = vsel %vm878_vm2, %v2481_v48, 0.0 }
 0x268   : > { %v1328_v22 = vsel %vm878_vm2, %v1320_v32, 0.0  ;;  %v888_v21 = vsel %vm878_vm2, %v2503_v62, 0.0  ;;  %v916_v6 = vsel %vm878_vm2, %v905_v3, 0.0  ;;  %v906_v49 = vmul.f32 %v2503_v62, %v2503_v62 }
 0x269   : > { %v1301_v4 = vadd.f32 %v1300_v51, %v1299_v1  ;;  %v1329_v5 = vadd.f32 %v1328_v22, %v1327_v53  ;;  %v889_v7 = vadd.f32 %v888_v21, %v887_v29  ;;  %v917_v13 = vadd.f32 %v916_v6, %v915_v46 }
 0x26a   : > { %v892_v19 = vsel %vm878_vm2, %v2493_v58, 0.0  ;;  %v908_v23 = vmul.f32 %v2493_v58, %v2493_v58  ;;  %v918_v36 = vsel %vm878_vm2, %v906_v49, 0.0  ;;  %v1332_v25 = vsel %vm878_vm2, %v1322_v59, 0.0 }
 0x26b   : > { %v1331_v0 = vadd.f32 %v1330_v10, %v1329_v5  ;;  %v891_v16 = vadd.f32 %v890_v61, %v889_v7  ;;  %v2523_v11 = vadd.f32 %v1302_v12, %v1301_v4  ;;  %v919_v56 = vadd.f32 %v918_v36, %v917_v13 }
 0x26c   : > { %v2521_v17 = vpop.f32.mrb[8].mxu1  ;;  %v920_v30 = vsel %vm878_vm2, %v907_v2, 0.0  ;;  %v922_v35 = vsel %vm878_vm2, %v908_v23, 0.0 }
 0x26d   : > { %v2530_v27 = vpop.f32.mrb[9].mxu1  ;;  %v893_v26 = vadd.f32 %v892_v19, %v891_v16  ;;  %v2540_v44 = vadd.f32 %v1332_v25, %v1331_v0  ;;  %v921_v24 = vadd.f32 %v920_v30, %v919_v56  ;;  %v1146_v39 = vmul.f32 %v2521_v17, %v2521_v17 }
 0x26e   : > { %v2533_v63 = vpop.f32.mrb[10].mxu1  ;;  %v1144_v31 = vmul.f32 %v2530_v27, %v2530_v27  ;;  %v1122_v34 = vsel %vm878_vm2, %v2530_v27, 0.0  ;;  %v1125_v41 = vsel %vm878_vm2, %v2521_v17, 0.0 }
 0x26f   : > { %v2538_v33 = vpop.f32.mrb[11].mxu1  ;;  %v894_v55 = vrot.slane %v893_v26, 4  ;;  %v923_v40 = vadd.f32 %v922_v35, %v921_v24  ;;  %v1147_v47 = vmul.f32 %v2533_v63, %v2533_v63  ;;  %v1127_v60 = vsel %vm878_vm2, %v2533_v63, 0.0 }
 0x270   : > { %v1123_v18 = vsel %vm878_vm2, %v2538_v33, 0.0  ;;  %v1145_v9 = vmul.f32 %v2538_v33, %v2538_v33  ;;  %v1152_v46 = vsel %vm878_vm2, %v1144_v31, 0.0  ;;  %v1155_v1 = vsel %vm878_vm2, %v1146_v39, 0.0 }
 0x271   : > { %v1124_v37 = vadd.f32 %v1123_v18, %v1122_v34  ;;  %v895_v38 = vadd.f32 %v894_v55, %v893_v26  ;;  %v924_v8 = vrot.slane %v923_v40, 4  ;;  %v1157_v5 = vsel %vm878_vm2, %v1147_v47, 0.0 }
 0x272   : > { %v1153_v52 = vsel %vm878_vm2, %v1145_v9, 0.0 }
 0x273   : > { %v1126_v51 = vadd.f32 %v1125_v41, %v1124_v37  ;;  %v896_v57 = vrot.slane %v895_v38, 2  ;;  %v1154_v32 = vadd.f32 %v1153_v52, %v1152_v46  ;;  %v925_v59 = vadd.f32 %v924_v8, %v923_v40 }
 0x274   : > { %v2559_v61 = vpop.f32.mrb[12].mxu1 }
 0x275   : > { %v1150_v2 = vmul.f32 %v2559_v61, %v2559_v61  ;;  %v2564_v29 = vpop.f32.mrb[13].mxu1  ;;  %v1128_v3 = vadd.f32 %v1127_v60, %v1126_v51  ;;  %v897_v53 = vadd.f32 %v896_v57, %v895_v38  ;;  %v1156_v22 = vadd.f32 %v1155_v1, %v1154_v32 }
 0x276   : > { %v1129_v21 = vsel %vm878_vm2, %v2564_v29, 0.0  ;;  %v2568_v4 = vpop.f32.mrb[14].mxu1  ;;  %v1148_v7 = vmul.f32 %v2564_v29, %v2564_v29  ;;  %v926_v12 = vrot.slane %v925_v59, 2  ;;  %v1133_v13 = vsel %vm878_vm2, %v2559_v61, 0.0 }
 0x277   : > { %v1130_v6 = vadd.f32 %v1129_v21, %v1128_v3  ;;  %v2573_v10 = vpop.f32.mrb[15].mxu1  ;;  %v1158_v49 = vadd.f32 %v1157_v5, %v1156_v22  ;;  %v898_v16 = vrot.slane %v897_v53, 1  ;;  %v1163_v26 = vsel %vm878_vm2, %v1150_v2, 0.0 }
 0x278   : > { %v2577_v0 = vpop.f32.mrb[12].mxu0  ;;  %v1159_v19 = vsel %vm878_vm2, %v1148_v7, 0.0  ;;  %v1131_v23 = vsel %vm878_vm2, %v2573_v10, 0.0  ;;  %v1149_v36 = vmul.f32 %v2573_v10, %v2573_v10  ;;  %v1135_v30 = vsel %vm878_vm2, %v2568_v4, 0.0 }
 0x279   : > { %v2584_v25 = vpop.f32.mrb[13].mxu0  ;;  %v1160_v56 = vadd.f32 %v1159_v19, %v1158_v49  ;;  %v1151_v31 = vmul.f32 %v2568_v4, %v2568_v4  ;;  %v2593_v24 = vadd.f32 %v926_v12, %v925_v59  ;;  %v1132_v34 = vadd.f32 %v1131_v23, %v1130_v6 }
 0x27a   : > { %v2591_v55 = vpop.f32.mrb[14].mxu0  ;;  %v1161_v18 = vsel %vm878_vm2, %v1149_v36, 0.0  ;;  %v1304_v35 = vsel %vm878_vm2, %v2584_v25, 0.0  ;;  %v1325_v9 = vmul.f32 %v2577_v0, %v2577_v0  ;;  %v1323_v40 = vmul.f32 %v2584_v25, %v2584_v25 }
 0x27b   : > { %v2598_v39 = vpop.f32.mrb[15].mxu0  ;;  %v1162_v37 = vadd.f32 %v1161_v18, %v1160_v56  ;;  %v1305_v38 = vadd.f32 %v1304_v35, %v2523_v11  ;;  %v2607_v46 = vadd.f32 %v898_v16, %v897_v53  ;;  %v1134_v47 = vadd.f32 %v1133_v13, %v1132_v34 }
 0x27c   : > { %v2605_v41 = vpop.f32.mrb[16].mxu1  ;;  %v1308_v51 = vsel %vm878_vm2, %v2577_v0, 0.0  ;;  %v1326_v52 = vmul.f32 %v2591_v55, %v2591_v55  ;;  %v1165_v8 = vsel %vm878_vm2, %v1151_v31, 0.0  ;;  %v1334_v11 = vsel %vm878_vm2, %v1323_v40, 0.0 }
 0x27d   : > { %v2613_v57 = vpop.f32.mrb[17].mxu1  ;;  %v1164_v60 = vadd.f32 %v1163_v26, %v1162_v37  ;;  %v1306_v32 = vsel %vm878_vm2, %v2598_v39, 0.0  ;;  %v928_v2 = vrot.slane %v2593_v24, 1  ;;  %v1136_v3 = vadd.f32 %v1135_v30, %v1134_v47 }
 0x27e   : > { %v2619_v1 = vpop.f32.mrb[18].mxu1  ;;  %v1335_v53 = vadd.f32 %v1334_v11, %v2540_v44  ;;  %v1307_v59 = vadd.f32 %v1306_v32, %v1305_v38  ;;  %v1338_v5 = vsel %vm878_vm2, %v1325_v9, 0.0  ;;  %v1324_v6 = vmul.f32 %v2598_v39, %v2598_v39 }
 0x27f   : > { %v2623_v22 = vpop.f32.mrb[19].mxu1  ;;  %v1166_v21 = vadd.f32 %v1165_v8, %v1164_v60  ;;  %v1481_v7 = vmul.f32 %v2605_v41, %v2605_v41  ;;  %v1137_v12 = vrot.slane %v1136_v3, 4  ;;  %v1310_v13 = vsel %vm878_vm2, %v2591_v55, 0.0 }
 0x280   : > { %v1340_v49 = vsel %vm878_vm2, %v1326_v52, 0.0  ;;  %v1309_v16 = vadd.f32 %v1308_v51, %v1307_v59  ;;  %v1336_v19 = vsel %vm878_vm2, %v1324_v6, 0.0  ;;  %v1460_v23 = vsel %vm878_vm2, %v2605_v41, 0.0 }
 0x281   : > { %v1167_v44 = vrot.slane %v1166_v21, 4  ;;  %v1479_v36 = vmul.f32 %v2613_v57, %v2613_v57  ;;  %v1138_v26 = vadd.f32 %v1137_v12, %v1136_v3  ;;  %v1337_v30 = vadd.f32 %v1336_v19, %v1335_v53 }
 0x282   : > { %v1311_v56 = vadd.f32 %v1310_v13, %v1309_v16  ;;  %v1457_v31 = vsel %vm878_vm2, %v2613_v57, 0.0  ;;  %v1490_v18 = vsel %vm878_vm2, %v1481_v7, 0.0  ;;  %v1458_v35 = vsel %vm878_vm2, %v2623_v22, 0.0 }
 0x283   : > { %v1168_v34 = vadd.f32 %v1167_v44, %v1166_v21  ;;  %v1480_v37 = vmul.f32 %v2623_v22, %v2623_v22  ;;  %v1139_v38 = vrot.slane %v1138_v26, 2  ;;  %v1339_v47 = vadd.f32 %v1338_v5, %v1337_v30 }
 0x284   : > { %v2645_v9 = vpop.f32.mrb[20].mxu1  ;;  %v1312_v40 = vrot.slane %v1311_v56, 4  ;;  %v1459_v51 = vadd.f32 %v1458_v35, %v1457_v31  ;;  %v1487_v60 = vsel %vm878_vm2, %v1479_v36, 0.0  ;;  %v1482_v11 = vmul.f32 %v2619_v1, %v2619_v1 }
 0x285   : > { %v2647_v52 = vpop.f32.mrb[21].mxu1  ;;  %v1169_v8 = vrot.slane %v1168_v34, 2  ;;  %v1488_v32 = vsel %vm878_vm2, %v1480_v37, 0.0  ;;  %v1140_v53 = vadd.f32 %v1139_v38, %v1138_v26  ;;  %v1341_v21 = vadd.f32 %v1340_v49, %v1339_v47 }
 0x286   : > { %v2653_v3 = vpop.f32.mrb[22].mxu1  ;;  %v1313_v59 = vadd.f32 %v1312_v40, %v1311_v56  ;;  %v1461_v6 = vadd.f32 %v1460_v23, %v1459_v51  ;;  %v1462_v12 = vsel %vm878_vm2, %v2619_v1, 0.0  ;;  %v1489_v13 = vadd.f32 %v1488_v32, %v1487_v60 }
 0x287   : > { %v2655_v7 = vpop.f32.mrb[23].mxu1  ;;  %v1170_v5 = vadd.f32 %v1169_v8, %v1168_v34  ;;  %v1464_v16 = vsel %vm878_vm2, %v2647_v52, 0.0  ;;  %v1141_v44 = vrot.slane %v1140_v53, 1  ;;  %v1342_v36 = vrot.slane %v1341_v21, 4 }
 0x288   : > { %v1314_v19 = vrot.slane %v1313_v59, 2  ;;  %v1463_v30 = vadd.f32 %v1462_v12, %v1461_v6  ;;  %v1492_v26 = vsel %vm878_vm2, %v1482_v11, 0.0  ;;  %v1491_v56 = vadd.f32 %v1490_v18, %v1489_v13 }
 0x289   : > { %v1171_v31 = vrot.slane %v1170_v5, 1  ;;  %v1483_v49 = vmul.f32 %v2647_v52, %v2647_v52  ;;  %v1142_v23 = vadd.f32 %v1141_v44, %v1140_v53  ;;  %v1343_v35 = vadd.f32 %v1342_v36, %v1341_v21 }
 0x28a   : > { %v1315_v34 = vadd.f32 %v1314_v19, %v1313_v59  ;;  %v1465_v37 = vadd.f32 %v1464_v16, %v1463_v30  ;;  %v929_v38 = vadd.f32 %v928_v2, %v2593_v24  ;;  %v1493_v47 = vadd.f32 %v1492_v26, %v1491_v56 }
 0x28b   : > { %v1172_v40 = vadd.f32 %v1171_v31, %v1170_v5  ;;  %v1494_v51 = vsel %vm878_vm2, %v1483_v49, 0.0  ;;  %v1143_v8 = vadd.f32 %v1142_v23, %v2607_v46  ;;  %v1344_v32 = vrot.slane %v1343_v35, 2 }
 0x28c   : > { %v1316_v60 = vrot.slane %v1315_v34, 1  ;;  %v1485_v18 = vmul.f32 %v2645_v9, %v2645_v9  ;;  %v1495_v6 = vadd.f32 %v1494_v51, %v1493_v47  ;;  %v1466_v53 = vsel %vm878_vm2, %v2655_v7, 0.0 }
 0x28d   : > { %v1173_v11 = vadd.f32 %v1172_v40, %v929_v38  ;;  %v1484_v59 = vmul.f32 %v2655_v7, %v2655_v7  ;;  %v1345_v2 = vadd.f32 %v1344_v32, %v1343_v35  ;;  %v1467_v21 = vadd.f32 %v1466_v53, %v1465_v37 }
 0x28e   : > { %v1317_v24 = vadd.f32 %v1316_v60, %v1315_v34  ;;  %v1468_v5 = vsel %vm878_vm2, %v2645_v9, 0.0  ;;  %v1486_v46 = vmul.f32 %v2653_v3, %v2653_v3  ;;  %v1498_v36 = vsel %vm878_vm2, %v1485_v18, 0.0 }
 0x28f   : > { %v1496_v12 = vsel %vm878_vm2, %v1484_v59, 0.0  ;;  %v1346_v16 = vrot.slane %v1345_v2, 1  ;;  %v1469_v44 = vadd.f32 %v1468_v5, %v1467_v21  ;;  %v1470_v30 = vsel %vm878_vm2, %v2653_v3, 0.0 }
 0x290   : > { %v1318_v13 = vadd.f32 %v1317_v24, %v1143_v8  ;;  %v1497_v19 = vadd.f32 %v1496_v12, %v1495_v6  ;;  %v1500_v49 = vsel %vm878_vm2, %v1486_v46, 0.0 }
 0x291   : > { %v1347_v31 = vadd.f32 %v1346_v16, %v1345_v2  ;;  %v1471_v26 = vadd.f32 %v1470_v30, %v1469_v44 }
 0x292   : > { %v1499_v56 = vadd.f32 %v1498_v36, %v1497_v19 }
 0x293   : > { %v1348_v23 = vadd.f32 %v1347_v31, %v1173_v11  ;;  %v1472_v34 = vrot.slane %v1471_v26, 4 }
 0x294   : > { %v1501_v35 = vadd.f32 %v1500_v49, %v1499_v56 }
 0x295   : > { %v1473_v37 = vadd.f32 %v1472_v34, %v1471_v26 }
 0x296   : > { %v1502_v38 = vrot.slane %v1501_v35, 4 }
 0x297   : > { %v1474_v40 = vrot.slane %v1473_v37, 2 }
 0x298   : > { %v1503_v47 = vadd.f32 %v1502_v38, %v1501_v35 }
 0x299   : > { %v1475_v51 = vadd.f32 %v1474_v40, %v1473_v37 }
 0x29a   : > { %v1504_v8 = vrot.slane %v1503_v47, 2 }
 0x29b   : > { %v1476_v60 = vrot.slane %v1475_v51, 1 }
 0x29c   : > { %v1505_v32 = vadd.f32 %v1504_v8, %v1503_v47 }
 0x29d   : > { %v1477_v18 = vadd.f32 %v1476_v60, %v1475_v51 }
 0x29e   : > { %v1506_v6 = vrot.slane %v1505_v32, 1 }
 0x29f   : > { %v1478_v53 = vadd.f32 %v1477_v18, %v1318_v13 }
 0x2a0   : > { %v1507_v59 = vadd.f32 %v1506_v6, %v1505_v32 }
 0x2a1   : > { %v2682_v2 = vmul.f32 0.00390625, %v1478_v53 }
 0x2a2   : > { %v1508_v24 = vadd.f32 %v1507_v59, %v1348_v23 }
 0x2a3   : > { %v1511_v11 = vmul.f32 %v2682_v2, %v2682_v2  ;;  %v1581_v5 = vsub.f32 %v2655_v7, %v2682_v2  ;;  %v1538_v46 = vsub.f32 %v2521_v17, %v2682_v2  ;;  %v1539_v12 = vsub.f32 %v2533_v63, %v2682_v2 }
 0x2a4   : > { %v1510_v21 = vmul.f32 0.00390625, %v1508_v24  ;;  %v1536_v13 = vsub.f32 %v2530_v27, %v2682_v2  ;;  %v1537_v16 = vsub.f32 %v2538_v33, %v2682_v2  ;;  %v1542_v44 = vsub.f32 %v2559_v61, %v2682_v2 }
 0x2a5   : > { %v1543_v36 = vsub.f32 %v2568_v4, %v2682_v2  ;;  %v1540_v7 = vsub.f32 %v2564_v29, %v2682_v2  ;;  %v1541_v17 = vsub.f32 %v2573_v10, %v2682_v2  ;;  %v1558_v63 = vsub.f32 %v2473_v43, %v2682_v2 }
 0x2a6   : > { %v1512_v19 = vsub.f32 %v1510_v21, %v1511_v11  ;;  %v1559_v27 = vsub.f32 %v2481_v48, %v2682_v2  ;;  %v1556_v33 = vsub.f32 %v2475_v15, %v2682_v2  ;;  %v1557_v61 = vsub.f32 %v2489_v54, %v2682_v2 }
 0x2a7   : > { %v1562_v4 = vsub.f32 %v2577_v0, %v2682_v2  ;;  %v1563_v29 = vsub.f32 %v2591_v55, %v2682_v2  ;;  %v1560_v10 = vsub.f32 %v2584_v25, %v2682_v2  ;;  %v1561_v43 = vsub.f32 %v2598_v39, %v2682_v2 }
 0x2a8   : > { %v1513_v30 = vmax.f32 %v1512_v19, 0.0  ;;  %v1578_v48 = vsub.f32 %v2605_v41, %v2682_v2  ;;  %v1579_v15 = vsub.f32 %v2619_v1, %v2682_v2  ;;  %v1576_v54 = vsub.f32 %v2613_v57, %v2682_v2 }
 0x2a9   : > { %v1577_v0 = vsub.f32 %v2623_v22, %v2682_v2  ;;  %v1582_v55 = vsub.f32 %v2645_v9, %v2682_v2  ;;  %v1583_v25 = vsub.f32 %v2653_v3, %v2682_v2  ;;  %v1580_v39 = vsub.f32 %v2647_v52, %v2682_v2 }
 0x2aa   : > { %v1514_v31 = vadd.f32 1e-05, %v1513_v30  ;;  %v1518_v41 = vsub.f32 %v2445_v14, %v2682_v2  ;;  %v1519_v1 = vsub.f32 %v2451_v20, %v2682_v2  ;;  %v1516_v57 = vsub.f32 %v2447_v28, %v2682_v2 }
 0x2ab   : > { %v1517_v22 = vsub.f32 %v2453_v42, %v2682_v2  ;;  %v1522_v9 = vsub.f32 %v2477_v45, %v2682_v2  ;;  %v1523_v3 = vsub.f32 %v2493_v58, %v2682_v2  ;;  %v1520_v52 = vsub.f32 %v2483_v50, %v2682_v2 }
 0x2ac   : > { %2010 = vrsqrt.f32 %v1514_v31  ;;  %v1521_v14 = vsub.f32 %v2503_v62, %v2682_v2 }
 0x2b6   : > { %v2011_v20 = vpop.eup %2010 }
 0x2b7   : > { %v1589_v26 = vmul.f32 %v2011_v20, %v1581_v5  ;;  %v1546_v56 = vmul.f32 %v2011_v20, %v1538_v46  ;;  %v1547_v28 = vmul.f32 %v2011_v20, %v1539_v12  ;;  %v1544_v49 = vmul.f32 %v2011_v20, %v1536_v13 }
 0x2b8   : > { %v1545_v23 = vmul.f32 %v2011_v20, %v1537_v16  ;;  %v1550_v34 = vmul.f32 %v2011_v20, %v1542_v44  ;;  %v1551_v42 = vmul.f32 %v2011_v20, %v1543_v36  ;;  %v1548_v35 = vmul.f32 %v2011_v20, %v1540_v7 }
 0x2b9   : > { %v1553_v37 = vpack.c.bf16 %v1547_v28, %v1546_v56  ;;  %v1549_v45 = vmul.f32 %v2011_v20, %v1541_v17  ;;  %v1566_v38 = vmul.f32 %v2011_v20, %v1558_v63  ;;  %v1567_v40 = vmul.f32 %v2011_v20, %v1559_v27 }
 0x2ba   : > { %v1552_v58 = vpack.c.bf16 %v1545_v23, %v1544_v49  ;;  %v1555_v47 = vpack.c.bf16 %v1551_v42, %v1550_v34  ;;  %v1564_v51 = vmul.f32 %v2011_v20, %v1556_v33  ;;  %v1565_v50 = vmul.f32 %v2011_v20, %v1557_v61 }
 0x2bb   : > { %1602 = vrot.lane.b32.xlu0 %v1553_v37, %s2024_s21  ;;  %v1554_v62 = vpack.c.bf16 %v1549_v45, %v1548_v35  ;;  %v1573_v8 = vpack.c.bf16 %v1567_v40, %v1566_v38  ;;  %v1570_v60 = vmul.f32 %v2011_v20, %v1562_v4  ;;  %v1571_v32 = vmul.f32 %v2011_v20, %v1563_v29 }
 0x2bc   : > { %1600 = vrot.lane.b32.xlu1 %v1552_v58, %s2024_s21  ;;  %v1572_v18 = vpack.c.bf16 %v1565_v50, %v1564_v51  ;;  %v1568_v6 = vmul.f32 %v2011_v20, %v1560_v10  ;;  %v1569_v53 = vmul.f32 %v2011_v20, %v1561_v43  ;;  %v1586_v59 = vmul.f32 %v2011_v20, %v1578_v48 }
 0x2bd   : > { %v1575_v24 = vpack.c.bf16 %v1571_v32, %v1570_v60  ;;  %v1587_v2 = vmul.f32 %v2011_v20, %v1579_v15  ;;  %v1584_v21 = vmul.f32 %v2011_v20, %v1576_v54  ;;  %v1585_v11 = vmul.f32 %v2011_v20, %v1577_v0 }
 0x2be   : > { %v1574_v5 = vpack.c.bf16 %v1569_v53, %v1568_v6  ;;  %v1590_v46 = vmul.f32 %v2011_v20, %v1582_v55  ;;  %v1591_v12 = vmul.f32 %v2011_v20, %v1583_v25  ;;  %v1588_v13 = vmul.f32 %v2011_v20, %v1580_v39 }
 0x2bf   : > { %1606 = vrot.lane.b32.xlu0 %v1555_v47, %s2024_s21  ;;  %v1593_v16 = vpack.c.bf16 %v1587_v2, %v1586_v59  ;;  %v1592_v44 = vpack.c.bf16 %v1585_v11, %v1584_v21  ;;  %v1526_v19 = vmul.f32 %v2011_v20, %v1518_v41  ;;  %v1527_v36 = vmul.f32 %v2011_v20, %v1519_v1 }
 0x2c0   : > { %1604 = vrot.lane.b32.xlu1 %v1554_v62, %s2024_s21  ;;  %v1595_v7 = vpack.c.bf16 %v1591_v12, %v1590_v46  ;;  %v1594_v17 = vpack.c.bf16 %v1589_v26, %v1588_v13  ;;  %v1524_v63 = vmul.f32 %v2011_v20, %v1516_v57  ;;  %v1525_v27 = vmul.f32 %v2011_v20, %v1517_v22 }
 0x2c1   : > { %v1533_v33 = vpack.c.bf16 %v1527_v36, %v1526_v19  ;;  %v1530_v61 = vmul.f32 %v2011_v20, %v1522_v9  ;;  %v1531_v30 = vmul.f32 %v2011_v20, %v1523_v3  ;;  %v1528_v4 = vmul.f32 %v2011_v20, %v1520_v52 }
 0x2c2   : > { %v1532_v29 = vpack.c.bf16 %v1525_v27, %v1524_v63  ;;  %v1529_v10 = vmul.f32 %v2011_v20, %v1521_v14 }
 0x2c3   : > { %1614 = vrot.lane.b32.xlu0 %v1573_v8, %s2022_s6  ;;  %v1535_v43 = vpack.c.bf16 %v1531_v30, %v1530_v61 }
 0x2c4   : > { %1612 = vrot.lane.b32.xlu1 %v1572_v18, %s2022_s6  ;;  %v1534_v48 = vpack.c.bf16 %v1529_v10, %v1528_v4 }
 0x2c7   : > { %1618 = vrot.lane.b32.xlu0 %v1575_v24, %s2022_s6 }
 0x2c8   : > { %1616 = vrot.lane.b32.xlu1 %v1574_v5, %s2022_s6 }
 0x2cb   : > { %1626 = vrot.lane.b32.xlu0 %v1593_v16, %s2025_s22 }
 0x2cc   : > { %1624 = vrot.lane.b32.xlu1 %v1592_v44, %s2025_s22 }
 0x2cf   : > { %1630 = vrot.lane.b32.xlu0 %v1595_v7, %s2025_s22 }
 0x2d0   : > { %1628 = vrot.lane.b32.xlu1 %v1594_v17, %s2025_s22 }
 0x32d   : > { %v1603_v15 = vpop.permute.xlu0 %1602 }
 0x32e   : > { %v1601_v54 = vpop.permute.xlu1 %1600  ;;  %v1637_v1 = vsel %vm878_vm2, %v1533_v33, %v1603_v15 }
 0x32f   : > { %v1634_v57 = vsel %vm878_vm2, %v1532_v29, %v1601_v54 }
 0x331   : > { %v1607_v31 = vpop.permute.xlu0 %1606 }
 0x332   : > { %v1605_v0 = vpop.permute.xlu1 %1604  ;;  %v1643_v28 = vsel %vm878_vm2, %v1535_v43, %v1607_v31 }
 0x333   : > { %v1640_v34 = vsel %vm878_vm2, %v1534_v48, %v1605_v0 }
 0x335   : > { %v1615_v55 = vpop.permute.xlu0 %1614 }
 0x336   : > { %v1613_v25 = vpop.permute.xlu1 %1612  ;;  %v1647_v22 = vsel %vm757_vm14, %v1637_v1, %v1615_v55 }
 0x337   : > { %v1645_v3 = vsel %vm757_vm14, %v1634_v57, %v1613_v25 }
 0x339   : > { %v1619_v39 = vpop.permute.xlu0 %1618 }
 0x33a   : > { %v1617_v41 = vpop.permute.xlu1 %1616  ;;  %v1651_v42 = vsel %vm757_vm14, %v1643_v28, %v1619_v39 }
 0x33b   : > { %v1649_v37 = vsel %vm757_vm14, %v1640_v34, %v1617_v41 }
 0x33d   : > { %v1627_v9 = vpop.permute.xlu0 %1626 }
 0x33e   : > { %v1656_v52 = vsel %vm1652_vm3, %v1647_v22, %v1627_v9  ;;  %v1625_v14 = vpop.permute.xlu1 %1624 }
 0x33f   : > { %v1857_v20 = vcombine.low %v1656_v52, %v1656_v52  ;;  %v1858_v26 = vcombine.high %v1656_v52, %v1656_v52  ;;  %v1654_v56 = vsel %vm1652_vm3, %v1645_v3, %v1625_v14 }
 0x340   : > { %v1855_v49 = vcombine.low %v1654_v56, %v1654_v56  ;;  %v1856_v23 = vcombine.high %v1654_v56, %v1654_v56 }
 0x341   : > { %1692 = vst.msk [vmem:[%s170_s25 + $0x8] sm:$0xf] %vm1689_vm4, %v1857_v20  ;;  %1693 = vst.msk [vmem:[%s170_s25 + $0xc] sm:$0xf] %vm1689_vm4, %v1858_v26  ;;  %v1631_v35 = vpop.permute.xlu0 %1630 }
 0x342   : > { %1690 = vst.msk [vmem:[%s170_s25] sm:$0xf] %vm1689_vm4, %v1855_v49  ;;  %1691 = vst.msk [vmem:[%s170_s25 + $0x4] sm:$0xf] %vm1689_vm4, %v1856_v23  ;;  %v1660_v45 = vsel %vm1652_vm3, %v1651_v42, %v1631_v35  ;;  %v1629_v38 = vpop.permute.xlu1 %1628 }
 0x343   : > { %v1861_v40 = vcombine.low %v1660_v45, %v1660_v45  ;;  %v1862_v58 = vcombine.high %v1660_v45, %v1660_v45  ;;  %v1658_v47 = vsel %vm1652_vm3, %v1649_v37, %v1629_v38 }
 0x344   : > { %v1859_v51 = vcombine.low %v1658_v47, %v1658_v47  ;;  %v1860_v50 = vcombine.high %v1658_v47, %v1658_v47 }
 0x345   : > { %1696 = vst.msk [vmem:[%s170_s25 + $0x18] sm:$0xf] %vm1689_vm4, %v1861_v40  ;;  %1697 = vst.msk [vmem:[%s170_s25 + $0x1c] sm:$0xf] %vm1689_vm4, %v1862_v58 }
 0x346   : > { %1694 = vst.msk [vmem:[%s170_s25 + $0x10] sm:$0xf] %vm1689_vm4, %v1859_v51  ;;  %1695 = vst.msk [vmem:[%s170_s25 + $0x14] sm:$0xf] %vm1689_vm4, %v1860_v50 }
 0x347 PF: > { %s13_s12 = sadd.s32 1, %s2018_s12  }
 0x348   : > { %p10_p4 = scmp.ge.s32.totalorder %s13_s12, 4  }
 0x34a   :  { %12 = sbr.rel (!%p10_p4) target bundleno = 1 (0x1), region = 67 }

</bundles_post_ra>
